<compile_context>
chip_gen: v7x
topology: tpu7x:2x2x1
jax: 0.10.0
libtpu: 0.0.40
codegen_flags: <defaults>
</compile_context>

<pallas_src>
import numpy as np

import jax
import jax.numpy as jnp
from jax import lax
from jax.experimental import pallas as pl
from jax.experimental.pallas import tpu as pltpu

TM = 256                     # row tile (use 128 on v5e)
ACT_DTYPE = jnp.bfloat16     # inter-layer activation storage dtype


# ------------------------------ geometry ------------------------------------

def _make_geom(n, h, w):
    hp, wp = h + 2, w + 2                      # zero-padded spatial dims
    assert TM >= wp + 1, "row tile must cover the 3x3 halo (<=~254 px wide)"
    rv = n * hp * wp                           # rows holding (padded) pixels
    r_out = ((rv + TM - 1) // TM) * TM         # rows every conv computes
    halo_up = TM                               # block-aligned leading halo
    r_s = halo_up + r_out + halo_up            # stored rows per activation
    return dict(n=n, h=h, w=w, hp=hp, wp=wp, rv=rv, r_out=r_out,
                halo_up=halo_up, r_s=r_s, grid=r_out // TM)


def _full_spec(shape):
    return pl.BlockSpec(shape, lambda i, _n=len(shape): (0,) * _n)


# ------------------- static masks / pooling matrices (numpy) ----------------

def _interior_mask(g):
    """(1, R_S, 1) f32: 1.0 on real pixels, 0.0 on padding / halo / junk."""
    m = np.zeros((g['hp'], g['wp']), np.float32)
    m[1:-1, 1:-1] = 1.0
    full = np.zeros((g['r_s'],), np.float32)
    full[g['halo_up']:g['halo_up'] + g['rv']] = np.tile(m.reshape(-1), g['n'])
    return jnp.asarray(full.reshape(1, g['r_s'], 1))


def _phase_masks(g_in, g_out):
    """(4, R_S_out, 1) masks for the stride-2 phase-decomposed input."""
    planes = []
    for ph in range(2):
        for pw in range(2):
            rr = 2 * np.arange(g_out['hp']) + ph - 2
            cc = 2 * np.arange(g_out['wp']) + pw - 2
            ok = (((rr >= 1) & (rr <= g_in['hp'] - 2))[:, None]
                  & ((cc >= 1) & (cc <= g_in['wp'] - 2))[None, :])
            full = np.zeros((g_out['r_s'],), np.float32)
            full[g_out['halo_up']:g_out['halo_up'] + g_out['rv']] = \
                np.tile(ok.astype(np.float32).reshape(-1), g_out['n'])
            planes.append(full)
    return jnp.asarray(np.stack(planes)[:, :, None])


def _pool_matrix(g):
    """(N, R_S) f32: per-image mean over the H*W real pixels."""
    m = np.zeros((g['hp'], g['wp']), np.float32)
    m[1:-1, 1:-1] = 1.0 / float(g['h'] * g['w'])
    p = np.zeros((g['n'], g['r_s']), np.float32)
    hw = g['hp'] * g['wp']
    for n in range(g['n']):
        base = g['halo_up'] + n * hw
        p[n, base:base + hw] = m.reshape(-1)
    return jnp.asarray(p)


# --------------------------- layout helpers (XLA) ----------------------------

def _image_to_rows(x_nhwc, g, cin_pad):
    n, h, w, c = x_nhwc.shape
    xp = jnp.pad(x_nhwc, ((0, 0), (1, 1), (1, 1), (0, cin_pad - c)))
    flat = xp.reshape(g['rv'], cin_pad).astype(ACT_DTYPE)
    full = jnp.zeros((g['r_s'], cin_pad), ACT_DTYPE)
    full = lax.dynamic_update_slice(full, flat, (g['halo_up'], 0))
    return full[None]                                   # (1, R_S, Cin)


def _phase_decompose(a_rows, g_in, g_out):
    """Build the 4 parity planes (output geometry) for a stride-2 conv."""
    c = a_rows.shape[-1]
    data = a_rows[g_in['halo_up']:g_in['halo_up'] + g_in['rv'], :]
    img = data.reshape(g_in['n'], g_in['hp'], g_in['wp'], c)
    img = jnp.pad(img, ((0, 0), (2, 2), (2, 2), (0, 0)))
    planes = []
    for ph in range(2):
        for pw in range(2):
            sl = img[:, ph:ph + 2 * g_out['hp']:2,
                     pw:pw + 2 * g_out['wp']:2, :]
            flat = sl.reshape(g_out['rv'], c)
            full = jnp.zeros((g_out['r_s'], c), a_rows.dtype)
            full = lax.dynamic_update_slice(full, flat, (g_out['halo_up'], 0))
            planes.append(full)
    return jnp.stack(planes, axis=0)                    # (4, R_S_out, Cin)


def _prep_w3(w_oihw, cin_pad=None):
    cout, cin, kh, kw = w_oihw.shape
    w = jnp.transpose(w_oihw, (2, 3, 1, 0))             # (3, 3, Cin, Cout)
    if cin_pad is not None and cin_pad > cin:
        w = jnp.pad(w, ((0, 0), (0, 0), (0, cin_pad - cin), (0, 0)))
    return w.reshape(kh * kw, -1, cout).astype(jnp.bfloat16)


def _prep_w1(w_oihw):
    cout, cin = w_oihw.shape[:2]
    return jnp.transpose(w_oihw.reshape(cout, cin), (1, 0)).astype(jnp.bfloat16)


# ------------------------------ Pallas kernels -------------------------------

def _make_conv_kernel(planes_idx, tap_off, nwin, tm, relu, has_sc, has_res):
    """Fused [BN+ReLU+mask] -> 3x3 conv (-> 1x1 shortcut) (-> + residual)."""
    def kernel(*refs):
        idx = 0
        x_refs = refs[idx:idx + nwin]; idx += nwin
        m_refs = refs[idx:idx + nwin]; idx += nwin
        scale_ref, shift_ref, w_ref = refs[idx:idx + 3]; idx += 3
        wsc_ref = None
        if has_sc:
            wsc_ref = refs[idx]; idx += 1
        short_ref = None
        if has_res:
            short_ref = refs[idx]; idx += 1
        o_ref = refs[idx]; idx += 1
        sc_ref = None
        if has_sc:
            sc_ref = refs[idx]; idx += 1
        win_ref = refs[idx]                              # VMEM bf16 scratch

        i = pl.program_id(0)
        last = pl.num_programs(0) - 1
        is_real = jnp.logical_and(i > 0, i < last)

        @pl.when(is_real)
        def _compute():
            scale = scale_ref[...]
            shift = shift_ref[...]
            # Prologue hoisted out of the tap loop: once per window block.
            for wi in range(nwin):
                a = x_refs[wi][...].astype(jnp.float32) * scale + shift
                if relu:
                    a = jnp.maximum(a, 0.0)
                a = a * m_refs[wi][...]                  # 0/1 row mask multiply
                win_ref[:, wi * tm:(wi + 1) * tm, :] = a.astype(jnp.bfloat16)

            acc = None
            for kk in range(9):                          # unrolled (kh, kw) taps
                p, off = planes_idx[kk], tap_off[kk]
                t = win_ref[p, off:off + tm, :]          # (tm, Cin) bf16 ref slice
                part = jnp.dot(t, w_ref[kk],
                               preferred_element_type=jnp.float32)
                acc = part if acc is None else acc + part
                if has_sc and kk == 4:                   # centre tap == 1x1 input
                    sc_ref[...] = jnp.dot(
                        t, wsc_ref[...],
                        preferred_element_type=jnp.float32).astype(sc_ref.dtype)
            if has_res:
                acc = acc + short_ref[...].astype(jnp.float32)
            o_ref[...] = acc.astype(o_ref.dtype)

        @pl.when(jnp.logical_not(is_real))
        def _halo():                                     # deterministic zero halos
            o_ref[...] = jnp.zeros(o_ref.shape, o_ref.dtype)
            if has_sc:
                sc_ref[...] = jnp.zeros(sc_ref.shape, sc_ref.dtype)
    return kernel


def conv3x3_fused(ph, mask, scale, shift, w9, g, *, stride, relu,
                  wsc=None, shortcut=None):
    num_p, r_s, cin = ph.shape
    cout = w9.shape[-1]
    wp = g['wp']
    assert r_s == g['r_s'] and g['halo_up'] == TM
    assert num_p == (1 if stride == 1 else 4)

    if stride == 1:
        planes_idx = tuple(0 for _ in range(9))
        shifts = tuple((kh - 1) * wp + (kw - 1)
                       for kh in range(3) for kw in range(3))
    else:
        planes_idx = tuple(2 * (kh % 2) + (kw % 2)
                           for kh in range(3) for kw in range(3))
        shifts = tuple((kh // 2) * wp + (kw // 2)
                       for kh in range(3) for kw in range(3))

    # Window blocks (relative to output block - 1) actually touched by the taps
    lo_blk = min((TM + d) // TM for d in shifts)          # 0 (s=1) / 1 (s=2)
    hi_blk = max((2 * TM - 1 + d) // TM for d in shifts)  # 2
    win_blocks = list(range(lo_blk, hi_blk + 1))
    nwin = len(win_blocks)
    tap_off = tuple(TM + d - lo_blk * TM for d in shifts)

    nblk = r_s // TM                # grid covers ALL blocks (halos included)
    assert nblk == g['grid'] + 2
    has_sc = wsc is not None
    has_res = shortcut is not None

    def _win_idx(wb):
        off = wb - 1                # input block = (i - 1) + wb
        if off == 0:
            return lambda i: (0, i, 0)
        if off < 0:
            return lambda i, _o=off: (0, jnp.maximum(i + _o, 0), 0)
        return lambda i, _o=off: (0, jnp.minimum(i + _o, nblk - 1), 0)

    in_specs, args = [], []
    for wb in win_blocks:
        in_specs.append(pl.BlockSpec((num_p, TM, cin), _win_idx(wb)))
        args.append(ph)
    for wb in win_blocks:
        in_specs.append(pl.BlockSpec((num_p, TM, 1), _win_idx(wb)))
        args.append(mask)
    in_specs += [_full_spec(scale.shape), _full_spec(shift.shape),
                 _full_spec(w9.shape)]
    args += [scale, shift, w9]
    if has_sc:
        in_specs.append(_full_spec(wsc.shape)); args.append(wsc)
    if has_res:
        in_specs.append(pl.BlockSpec((TM, cout), lambda i: (i, 0)))
        args.append(shortcut)

    o_spec = pl.BlockSpec((TM, cout), lambda i: (i, 0))
    o_sds = jax.ShapeDtypeStruct((r_s, cout), ACT_DTYPE)
    if has_sc:
        out_shape = (o_sds, jax.ShapeDtypeStruct((r_s, cout), ACT_DTYPE))
        out_specs = (o_spec, pl.BlockSpec((TM, cout), lambda i: (i, 0)))
    else:
        out_shape, out_specs = o_sds, o_spec

    kernel = _make_conv_kernel(planes_idx, tap_off, nwin, TM, relu,
                               has_sc, has_res)

    flops = 2 * g['r_out'] * 9 * cin * cout
    if has_sc:
        flops += 2 * g['r_out'] * cin * cout
    bytes_acc = int(nblk * nwin * num_p * TM * (cin * 2 + 4)
                    + w9.size * 2
                    + r_s * cout * 2 * (2 if has_sc else 1)
                    + (r_s * cout * 2 if has_res else 0))

    return pl.pallas_call(
        kernel,
        grid=(nblk,),
        in_specs=in_specs,
        out_specs=out_specs,
        out_shape=out_shape,
        scratch_shapes=[pltpu.VMEM((num_p, nwin * TM, cin), jnp.bfloat16)],
        compiler_params=pltpu.CompilerParams(
            dimension_semantics=("parallel",),
            vmem_limit_bytes=32 * 1024 * 1024),
        cost_estimate=pl.CostEstimate(flops=flops, transcendentals=0,
                                      bytes_accessed=bytes_acc),
    )(*args)


def _head_kernel(x_ref, scale_ref, shift_ref, psel_ref, wl_ref, b_ref,
                 o_ref, pooled_ref):
    i = pl.program_id(0)

    @pl.when(i == 0)
    def _init():
        pooled_ref[...] = jnp.zeros(pooled_ref.shape, jnp.float32)

    a = x_ref[...].astype(jnp.float32) * scale_ref[...] + shift_ref[...]
    pooled_ref[...] += jnp.dot(psel_ref[...], a,
                               preferred_element_type=jnp.float32)

    @pl.when(i == pl.num_programs(0) - 1)
    def _fin():
        o_ref[...] = (jnp.dot(pooled_ref[...], wl_ref[...],
                              preferred_element_type=jnp.float32) + b_ref[...])


def head_fused(a_rows, scale, shift, psel, wl, bias):
    """Final BN + masked global average pool (row-tiled) + logits matmul."""
    r_s, c = a_rows.shape
    n = psel.shape[0]
    nc = wl.shape[-1]
    nblk = r_s // TM
    return pl.pallas_call(
        _head_kernel,
        grid=(nblk,),
        in_specs=[pl.BlockSpec((TM, c), lambda i: (i, 0)),
                  _full_spec(scale.shape),
                  _full_spec(shift.shape),
                  pl.BlockSpec((n, TM), lambda i: (0, i)),
                  _full_spec(wl.shape),
                  _full_spec(bias.shape)],
        out_specs=pl.BlockSpec((n, nc), lambda i: (0, 0)),
        out_shape=jax.ShapeDtypeStruct((n, nc), jnp.float32),
        scratch_shapes=[pltpu.VMEM((n, c), jnp.float32)],
        compiler_params=pltpu.CompilerParams(
            dimension_semantics=("arbitrary",),
            vmem_limit_bytes=32 * 1024 * 1024),
    )(a_rows, scale, shift, psel, wl, bias)


# ------------------------------ parameters ----------------------------------

def _he_conv(key, cout, cin, k):
    std = (2.0 / (cin * k * k)) ** 0.5
    return std * jax.random.normal(key, (cout, cin, k, k), jnp.float32)


def _bn_params(key, c):
    k1, k2, k3, k4 = jax.random.split(key, 4)
    return dict(
        gamma=1.0 + 0.1 * jax.random.normal(k1, (c,), jnp.float32),
        beta=0.1 * jax.random.normal(k2, (c,), jnp.float32),
        mean=0.1 * jax.random.normal(k3, (c,), jnp.float32),
        var=1.0 + 0.05 * jnp.abs(jax.random.normal(k4, (c,), jnp.float32)),
    )


def _bn_scale_shift(bn, eps=1e-5):
    scale = bn['gamma'] / jnp.sqrt(bn['var'] + eps)
    shift = bn['beta'] - bn['mean'] * scale
    return scale, shift


def init_params(key, num_units=(1, 1, 1), num_classes=10):
    keys = iter(jax.random.split(key, 64))
    params = {'conv0_w': _he_conv(next(keys), 16, 3, 3)}
    strides = ([1] * num_units[0] + [2] + [1] * (num_units[1] - 1)
               + [2] + [1] * (num_units[2] - 1))
    channels = [16] * num_units[0] + [32] * num_units[1] + [64] * num_units[2]
    in_planes = 16
    blocks = []
    for stride, channel in zip(strides, channels):
        blk = dict(
            stride=stride,
            bn1=_bn_params(next(keys), in_planes),
            conv1_w=_he_conv(next(keys), channel, in_planes, 3),
            bn2=_bn_params(next(keys), channel),
            conv2_w=_he_conv(next(keys), channel, channel, 3),
            shortcut_w=(_he_conv(next(keys), channel, in_planes, 1)
                        if (stride != 1 or in_planes != channel) else None),
        )
        blocks.append(blk)
        in_planes = channel
    params['blocks'] = blocks
    params['bn'] = _bn_params(next(keys), 64)
    params['logit_w'] = (1.0 / 8.0) * jax.random.normal(
        next(keys), (num_classes, 64), jnp.float32)
    params['logit_b'] = 0.1 * jax.random.normal(
        next(keys), (num_classes,), jnp.float32)
    return params


# ------------------------------- forward ------------------------------------

def preact_resnet_forward(params, x_nchw):
    x = jnp.transpose(x_nchw, (0, 2, 3, 1)).astype(jnp.float32)   # NCHW->NHWC
    n, h, w, _ = x.shape
    g = _make_geom(n, h, w)
    mask = _interior_mask(g)

    # conv0 (identity prologue, Cin padded 3 -> 8)
    cin0 = 8
    ph = _image_to_rows(x, g, cin0)
    w0 = _prep_w3(params['conv0_w'], cin_pad=cin0)
    one = jnp.ones((1, 1, cin0), jnp.float32)
    zero = jnp.zeros((1, 1, cin0), jnp.float32)
    out = conv3x3_fused(ph, mask, one, zero, w0, g, stride=1, relu=False)

    for blk in params['blocks']:
        stride = blk['stride']
        s1, t1 = _bn_scale_shift(blk['bn1'])
        s2, t2 = _bn_scale_shift(blk['bn2'])
        w1 = _prep_w3(blk['conv1_w'])
        w2 = _prep_w3(blk['conv2_w'])
        wsc = (_prep_w1(blk['shortcut_w'])
               if blk['shortcut_w'] is not None else None)

        if stride == 1:
            g_next, ph1, mask1 = g, out[None], mask
        else:
            g_next = _make_geom(n, g['h'] // stride, g['w'] // stride)
            ph1 = _phase_decompose(out, g, g_next)
            mask1 = _phase_masks(g, g_next)

        # conv1: fused BN1+ReLU prologue (+ fused 1x1 projection shortcut)
        res = conv3x3_fused(ph1, mask1, s1[None, None], t1[None, None], w1,
                            g_next, stride=stride, relu=True, wsc=wsc)
        if wsc is not None:
            hmid, shortcut = res
        else:
            hmid, shortcut = res, out        # identity shortcut (same layout)

        # conv2: fused BN2+ReLU prologue + residual-add epilogue
        mask_next = mask if stride == 1 else _interior_mask(g_next)
        out = conv3x3_fused(hmid[None], mask_next, s2[None, None],
                            t2[None, None], w2, g_next, stride=1, relu=True,
                            shortcut=shortcut)
        g, mask = g_next, mask_next

    # fused final BN + global average pool (row-tiled) + logits
    sc, sh = _bn_scale_shift(params['bn'])
    logits = head_fused(out, sc[None], sh[None], _pool_matrix(g),
                        params['logit_w'].T.astype(jnp.float32),
                        params['logit_b'][None].astype(jnp.float32))
    return logits


# --------------------------- pure-JAX reference ------------------------------

def _ref_conv(x, w_oihw, stride, padding):
    w = jnp.transpose(w_oihw, (2, 3, 1, 0))                        # HWIO
    return lax.conv_general_dilated(
        x, w, (stride, stride), ((padding, padding), (padding, padding)),
        dimension_numbers=('NHWC', 'HWIO', 'NHWC'),
        precision=lax.Precision.HIGHEST)


def reference_forward(params, x_nchw):
    x = jnp.transpose(x_nchw, (0, 2, 3, 1)).astype(jnp.float32)

    def bn(v, bnp, relu):
        s, t = _bn_scale_shift(bnp)
        y = v * s + t
        return jnp.maximum(y, 0.0) if relu else y

    out = _ref_conv(x, params['conv0_w'], 1, 1)
    for blk in params['blocks']:
        pre = bn(out, blk['bn1'], True)
        shortcut = (_ref_conv(pre, blk['shortcut_w'], blk['stride'], 0)
                    if blk['shortcut_w'] is not None else out)
        h = _ref_conv(pre, blk['conv1_w'], blk['stride'], 1)
        h = bn(h, blk['bn2'], True)
        h = _ref_conv(h, blk['conv2_w'], 1, 1)
        out = h + shortcut
    out = bn(out, params['bn'], False)
    feat = jnp.mean(out, axis=(1, 2))
    return feat @ params['logit_w'].T + params['logit_b']


# --------------------------------- main --------------------------------------

if __name__ == "__main__":
    key = jax.random.PRNGKey(0)
    pkey, xkey = jax.random.split(key)
    params = init_params(pkey, num_units=(1, 1, 1), num_classes=10)

    # PyTorch-style NCHW input; conv0 expects 3 channels.
    x = jax.random.normal(xkey, (2, 3, 16, 16), jnp.float32)

    logits = preact_resnet_forward(params, x)
    logits = jax.block_until_ready(logits)
    assert logits.shape == (2, 10)

    ref = reference_forward(params, x)
    np.testing.assert_allclose(np.asarray(logits), np.asarray(ref),
                               rtol=5e-2, atol=5e-2)
    print("KERNEL_OK")
</pallas_src>

<mosaic_0001>
module attributes {stable_mosaic.version = 11 : i64} {
  func.func @kernel(%arg0: i32, %arg1: memref<1x256x8xbf16, #tpu.memory_space<vmem>>, %arg2: memref<1x256x8xbf16, #tpu.memory_space<vmem>>, %arg3: memref<1x256x8xbf16, #tpu.memory_space<vmem>>, %arg4: memref<1x256x1xf32, #tpu.memory_space<vmem>>, %arg5: memref<1x256x1xf32, #tpu.memory_space<vmem>>, %arg6: memref<1x256x1xf32, #tpu.memory_space<vmem>>, %arg7: memref<1x1x8xf32, #tpu.memory_space<vmem>>, %arg8: memref<1x1x8xf32, #tpu.memory_space<vmem>>, %arg9: memref<9x8x16xbf16, #tpu.memory_space<vmem>>, %arg10: memref<256x16xbf16, #tpu.memory_space<vmem>>, %arg11: memref<1x768x8xbf16, #tpu.memory_space<vmem>>) attributes {dimension_semantics = [#tpu.dimension_semantics<parallel>], iteration_bounds = array<i64: 5>, scalar_prefetch = 0 : i64, scratch_operands = 1 : i64, tpu.core_type = #tpu.core_type<tc>, window_params = [{transform_indices = @transform_0, window_bounds = array<i64: 1, 256, 8>}, {transform_indices = @transform_1, window_bounds = array<i64: 1, 256, 8>}, {transform_indices = @transform_2, window_bounds = array<i64: 1, 256, 8>}, {transform_indices = @transform_3, window_bounds = array<i64: 1, 256, 1>}, {transform_indices = @transform_4, window_bounds = array<i64: 1, 256, 1>}, {transform_indices = @transform_5, window_bounds = array<i64: 1, 256, 1>}, {pipeline_mode = #tpu.pipeline_mode<synchronous>, transform_indices = @transform_6, window_bounds = array<i64: 1, 1, 8>}, {pipeline_mode = #tpu.pipeline_mode<synchronous>, transform_indices = @transform_7, window_bounds = array<i64: 1, 1, 8>}, {pipeline_mode = #tpu.pipeline_mode<synchronous>, transform_indices = @transform_8, window_bounds = array<i64: 9, 8, 16>}, {transform_indices = @transform_9, window_bounds = array<i64: 256, 16>}]} {
    %c0_i32 = arith.constant 0 : i32
    %0 = arith.cmpi sgt, %arg0, %c0_i32 : i32
    %c4_i32 = arith.constant 4 : i32
    %1 = arith.cmpi slt, %arg0, %c4_i32 : i32
    %2 = arith.andi %0, %1 : i1
    %3 = arith.extui %2 : i1 to i32
    %c0_i32_0 = arith.constant 0 : i32
    %4 = arith.cmpi ne, %3, %c0_i32_0 : i32
    scf.if %4 {
      %c0 = arith.constant 0 : index
      %c0_2 = arith.constant 0 : index
      %c0_3 = arith.constant 0 : index
      %8 = vector.load %arg7[%c0, %c0_2, %c0_3] : memref<1x1x8xf32, #tpu.memory_space<vmem>>, vector<1x1x8xf32>
      %c0_4 = arith.constant 0 : index
      %c0_5 = arith.constant 0 : index
      %c0_6 = arith.constant 0 : index
      %9 = vector.load %arg8[%c0_4, %c0_5, %c0_6] : memref<1x1x8xf32, #tpu.memory_space<vmem>>, vector<1x1x8xf32>
      %c0_7 = arith.constant 0 : index
      %c0_8 = arith.constant 0 : index
      %c0_9 = arith.constant 0 : index
      %10 = vector.load %arg1[%c0_7, %c0_8, %c0_9] : memref<1x256x8xbf16, #tpu.memory_space<vmem>>, vector<1x256x8xbf16>
      %11 = arith.extf %10 : vector<1x256x8xbf16> to vector<1x256x8xf32>
      %12 = vector.broadcast %8 : vector<1x1x8xf32> to vector<1x256x8xf32>
      %13 = arith.mulf %11, %12 : vector<1x256x8xf32>
      %14 = vector.broadcast %9 : vector<1x1x8xf32> to vector<1x256x8xf32>
      %15 = arith.addf %13, %14 : vector<1x256x8xf32>
      %c0_10 = arith.constant 0 : index
      %c0_11 = arith.constant 0 : index
      %c0_12 = arith.constant 0 : index
      %16 = vector.load %arg4[%c0_10, %c0_11, %c0_12] : memref<1x256x1xf32, #tpu.memory_space<vmem>>, vector<1x256x1xf32>
      %17 = vector.broadcast %16 : vector<1x256x1xf32> to vector<1x256x8xf32>
      %18 = arith.mulf %15, %17 : vector<1x256x8xf32>
      %19 = arith.truncf %18 : vector<1x256x8xf32> to vector<1x256x8xbf16>
      %c0_13 = arith.constant 0 : index
      %c0_14 = arith.constant 0 : index
      %c0_15 = arith.constant 0 : index
      %20 = vector.load %arg11[%c0_13, %c0_14, %c0_15] : memref<1x768x8xbf16, #tpu.memory_space<vmem>>, vector<1x256x8xbf16>
      tpu.vector_store %arg11[%c0_13, %c0_14, %c0_15], %19 {strides = array<i32>} : memref<1x768x8xbf16, #tpu.memory_space<vmem>>, vector<1x256x8xbf16>,
      %c0_16 = arith.constant 0 : index
      %c0_17 = arith.constant 0 : index
      %c0_18 = arith.constant 0 : index
      %21 = vector.load %arg2[%c0_16, %c0_17, %c0_18] : memref<1x256x8xbf16, #tpu.memory_space<vmem>>, vector<1x256x8xbf16>
      %22 = arith.extf %21 : vector<1x256x8xbf16> to vector<1x256x8xf32>
      %23 = vector.broadcast %8 : vector<1x1x8xf32> to vector<1x256x8xf32>
      %24 = arith.mulf %22, %23 : vector<1x256x8xf32>
      %25 = vector.broadcast %9 : vector<1x1x8xf32> to vector<1x256x8xf32>
      %26 = arith.addf %24, %25 : vector<1x256x8xf32>
      %c0_19 = arith.constant 0 : index
      %c0_20 = arith.constant 0 : index
      %c0_21 = arith.constant 0 : index
      %27 = vector.load %arg5[%c0_19, %c0_20, %c0_21] : memref<1x256x1xf32, #tpu.memory_space<vmem>>, vector<1x256x1xf32>
      %28 = vector.broadcast %27 : vector<1x256x1xf32> to vector<1x256x8xf32>
      %29 = arith.mulf %26, %28 : vector<1x256x8xf32>
      %30 = arith.truncf %29 : vector<1x256x8xf32> to vector<1x256x8xbf16>
      %c0_22 = arith.constant 0 : index
      %c256 = arith.constant 256 : index
      %c0_23 = arith.constant 0 : index
      %31 = vector.load %arg11[%c0_22, %c256, %c0_23] : memref<1x768x8xbf16, #tpu.memory_space<vmem>>, vector<1x256x8xbf16>
      tpu.vector_store %arg11[%c0_22, %c256, %c0_23], %30 {strides = array<i32>} : memref<1x768x8xbf16, #tpu.memory_space<vmem>>, vector<1x256x8xbf16>,
      %c0_24 = arith.constant 0 : index
      %c0_25 = arith.constant 0 : index
      %c0_26 = arith.constant 0 : index
      %32 = vector.load %arg3[%c0_24, %c0_25, %c0_26] : memref<1x256x8xbf16, #tpu.memory_space<vmem>>, vector<1x256x8xbf16>
      %33 = arith.extf %32 : vector<1x256x8xbf16> to vector<1x256x8xf32>
      %34 = vector.broadcast %8 : vector<1x1x8xf32> to vector<1x256x8xf32>
      %35 = arith.mulf %33, %34 : vector<1x256x8xf32>
      %36 = vector.broadcast %9 : vector<1x1x8xf32> to vector<1x256x8xf32>
      %37 = arith.addf %35, %36 : vector<1x256x8xf32>
      %c0_27 = arith.constant 0 : index
      %c0_28 = arith.constant 0 : index
      %c0_29 = arith.constant 0 : index
      %38 = vector.load %arg6[%c0_27, %c0_28, %c0_29] : memref<1x256x1xf32, #tpu.memory_space<vmem>>, vector<1x256x1xf32>
      %39 = vector.broadcast %38 : vector<1x256x1xf32> to vector<1x256x8xf32>
      %40 = arith.mulf %37, %39 : vector<1x256x8xf32>
      %41 = arith.truncf %40 : vector<1x256x8xf32> to vector<1x256x8xbf16>
      %c0_30 = arith.constant 0 : index
      %c512 = arith.constant 512 : index
      %c0_31 = arith.constant 0 : index
      %42 = vector.load %arg11[%c0_30, %c512, %c0_31] : memref<1x768x8xbf16, #tpu.memory_space<vmem>>, vector<1x256x8xbf16>
      tpu.vector_store %arg11[%c0_30, %c512, %c0_31], %41 {strides = array<i32>} : memref<1x768x8xbf16, #tpu.memory_space<vmem>>, vector<1x256x8xbf16>,
      %c0_32 = arith.constant 0 : index
      %c237 = arith.constant 237 : index
      %c0_33 = arith.constant 0 : index
      %43 = vector.load %arg11[%c0_32, %c237, %c0_33] : memref<1x768x8xbf16, #tpu.memory_space<vmem>>, vector<1x256x8xbf16>
      %44 = vector.shape_cast %43 : vector<1x256x8xbf16> to vector<256x8xbf16>
      %c0_34 = arith.constant 0 : index
      %c0_35 = arith.constant 0 : index
      %c0_36 = arith.constant 0 : index
      %45 = vector.load %arg9[%c0_34, %c0_35, %c0_36] : memref<9x8x16xbf16, #tpu.memory_space<vmem>>, vector<1x8x16xbf16>
      %46 = vector.shape_cast %45 : vector<1x8x16xbf16> to vector<8x16xbf16>
      %cst = arith.constant dense<0.000000e+00> : vector<256x16xf32>
      %47 = tpu.matmul %44, %46, %cst {dimension_numbers = #tpu.dot_dimension_numbers<[1], [0], [0], [1], [0, 0, 1, 1], [], []>} : vector<256x8xbf16>, vector<8x16xbf16>, vector<256x16xf32> -> vector<256x16xf32>
      %c0_37 = arith.constant 0 : index
      %c238 = arith.constant 238 : index
      %c0_38 = arith.constant 0 : index
      %48 = vector.load %arg11[%c0_37, %c238, %c0_38] : memref<1x768x8xbf16, #tpu.memory_space<vmem>>, vector<1x256x8xbf16>
      %49 = vector.shape_cast %48 : vector<1x256x8xbf16> to vector<256x8xbf16>
      %c1 = arith.constant 1 : index
      %c0_39 = arith.constant 0 : index
      %c0_40 = arith.constant 0 : index
      %50 = vector.load %arg9[%c1, %c0_39, %c0_40] : memref<9x8x16xbf16, #tpu.memory_space<vmem>>, vector<1x8x16xbf16>
      %51 = vector.shape_cast %50 : vector<1x8x16xbf16> to vector<8x16xbf16>
      %cst_41 = arith.constant dense<0.000000e+00> : vector<256x16xf32>
      %52 = tpu.matmul %49, %51, %cst_41 {dimension_numbers = #tpu.dot_dimension_numbers<[1], [0], [0], [1], [0, 0, 1, 1], [], []>} : vector<256x8xbf16>, vector<8x16xbf16>, vector<256x16xf32> -> vector<256x16xf32>
      %53 = arith.addf %47, %52 : vector<256x16xf32>
      %c0_42 = arith.constant 0 : index
      %c239 = arith.constant 239 : index
      %c0_43 = arith.constant 0 : index
      %54 = vector.load %arg11[%c0_42, %c239, %c0_43] : memref<1x768x8xbf16, #tpu.memory_space<vmem>>, vector<1x256x8xbf16>
      %55 = vector.shape_cast %54 : vector<1x256x8xbf16> to vector<256x8xbf16>
      %c2 = arith.constant 2 : index
      %c0_44 = arith.constant 0 : index
      %c0_45 = arith.constant 0 : index
      %56 = vector.load %arg9[%c2, %c0_44, %c0_45] : memref<9x8x16xbf16, #tpu.memory_space<vmem>>, vector<1x8x16xbf16>
      %57 = vector.shape_cast %56 : vector<1x8x16xbf16> to vector<8x16xbf16>
      %cst_46 = arith.constant dense<0.000000e+00> : vector<256x16xf32>
      %58 = tpu.matmul %55, %57, %cst_46 {dimension_numbers = #tpu.dot_dimension_numbers<[1], [0], [0], [1], [0, 0, 1, 1], [], []>} : vector<256x8xbf16>, vector<8x16xbf16>, vector<256x16xf32> -> vector<256x16xf32>
      %59 = arith.addf %53, %58 : vector<256x16xf32>
      %c0_47 = arith.constant 0 : index
      %c255 = arith.constant 255 : index
      %c0_48 = arith.constant 0 : index
      %60 = vector.load %arg11[%c0_47, %c255, %c0_48] : memref<1x768x8xbf16, #tpu.memory_space<vmem>>, vector<1x256x8xbf16>
      %61 = vector.shape_cast %60 : vector<1x256x8xbf16> to vector<256x8xbf16>
      %c3 = arith.constant 3 : index
      %c0_49 = arith.constant 0 : index
      %c0_50 = arith.constant 0 : index
      %62 = vector.load %arg9[%c3, %c0_49, %c0_50] : memref<9x8x16xbf16, #tpu.memory_space<vmem>>, vector<1x8x16xbf16>
      %63 = vector.shape_cast %62 : vector<1x8x16xbf16> to vector<8x16xbf16>
      %cst_51 = arith.constant dense<0.000000e+00> : vector<256x16xf32>
      %64 = tpu.matmul %61, %63, %cst_51 {dimension_numbers = #tpu.dot_dimension_numbers<[1], [0], [0], [1], [0, 0, 1, 1], [], []>} : vector<256x8xbf16>, vector<8x16xbf16>, vector<256x16xf32> -> vector<256x16xf32>
      %65 = arith.addf %59, %64 : vector<256x16xf32>
      %c0_52 = arith.constant 0 : index
      %c256_53 = arith.constant 256 : index
      %c0_54 = arith.constant 0 : index
      %66 = vector.load %arg11[%c0_52, %c256_53, %c0_54] : memref<1x768x8xbf16, #tpu.memory_space<vmem>>, vector<1x256x8xbf16>
      %67 = vector.shape_cast %66 : vector<1x256x8xbf16> to vector<256x8xbf16>
      %c4 = arith.constant 4 : index
      %c0_55 = arith.constant 0 : index
      %c0_56 = arith.constant 0 : index
      %68 = vector.load %arg9[%c4, %c0_55, %c0_56] : memref<9x8x16xbf16, #tpu.memory_space<vmem>>, vector<1x8x16xbf16>
      %69 = vector.shape_cast %68 : vector<1x8x16xbf16> to vector<8x16xbf16>
      %cst_57 = arith.constant dense<0.000000e+00> : vector<256x16xf32>
      %70 = tpu.matmul %67, %69, %cst_57 {dimension_numbers = #tpu.dot_dimension_numbers<[1], [0], [0], [1], [0, 0, 1, 1], [], []>} : vector<256x8xbf16>, vector<8x16xbf16>, vector<256x16xf32> -> vector<256x16xf32>
      %71 = arith.addf %65, %70 : vector<256x16xf32>
      %c0_58 = arith.constant 0 : index
      %c257 = arith.constant 257 : index
      %c0_59 = arith.constant 0 : index
      %72 = vector.load %arg11[%c0_58, %c257, %c0_59] : memref<1x768x8xbf16, #tpu.memory_space<vmem>>, vector<1x256x8xbf16>
      %73 = vector.shape_cast %72 : vector<1x256x8xbf16> to vector<256x8xbf16>
      %c5 = arith.constant 5 : index
      %c0_60 = arith.constant 0 : index
      %c0_61 = arith.constant 0 : index
      %74 = vector.load %arg9[%c5, %c0_60, %c0_61] : memref<9x8x16xbf16, #tpu.memory_space<vmem>>, vector<1x8x16xbf16>
      %75 = vector.shape_cast %74 : vector<1x8x16xbf16> to vector<8x16xbf16>
      %cst_62 = arith.constant dense<0.000000e+00> : vector<256x16xf32>
      %76 = tpu.matmul %73, %75, %cst_62 {dimension_numbers = #tpu.dot_dimension_numbers<[1], [0], [0], [1], [0, 0, 1, 1], [], []>} : vector<256x8xbf16>, vector<8x16xbf16>, vector<256x16xf32> -> vector<256x16xf32>
      %77 = arith.addf %71, %76 : vector<256x16xf32>
      %c0_63 = arith.constant 0 : index
      %c273 = arith.constant 273 : index
      %c0_64 = arith.constant 0 : index
      %78 = vector.load %arg11[%c0_63, %c273, %c0_64] : memref<1x768x8xbf16, #tpu.memory_space<vmem>>, vector<1x256x8xbf16>
      %79 = vector.shape_cast %78 : vector<1x256x8xbf16> to vector<256x8xbf16>
      %c6 = arith.constant 6 : index
      %c0_65 = arith.constant 0 : index
      %c0_66 = arith.constant 0 : index
      %80 = vector.load %arg9[%c6, %c0_65, %c0_66] : memref<9x8x16xbf16, #tpu.memory_space<vmem>>, vector<1x8x16xbf16>
      %81 = vector.shape_cast %80 : vector<1x8x16xbf16> to vector<8x16xbf16>
      %cst_67 = arith.constant dense<0.000000e+00> : vector<256x16xf32>
      %82 = tpu.matmul %79, %81, %cst_67 {dimension_numbers = #tpu.dot_dimension_numbers<[1], [0], [0], [1], [0, 0, 1, 1], [], []>} : vector<256x8xbf16>, vector<8x16xbf16>, vector<256x16xf32> -> vector<256x16xf32>
      %83 = arith.addf %77, %82 : vector<256x16xf32>
      %c0_68 = arith.constant 0 : index
      %c274 = arith.constant 274 : index
      %c0_69 = arith.constant 0 : index
      %84 = vector.load %arg11[%c0_68, %c274, %c0_69] : memref<1x768x8xbf16, #tpu.memory_space<vmem>>, vector<1x256x8xbf16>
      %85 = vector.shape_cast %84 : vector<1x256x8xbf16> to vector<256x8xbf16>
      %c7 = arith.constant 7 : index
      %c0_70 = arith.constant 0 : index
      %c0_71 = arith.constant 0 : index
      %86 = vector.load %arg9[%c7, %c0_70, %c0_71] : memref<9x8x16xbf16, #tpu.memory_space<vmem>>, vector<1x8x16xbf16>
      %87 = vector.shape_cast %86 : vector<1x8x16xbf16> to vector<8x16xbf16>
      %cst_72 = arith.constant dense<0.000000e+00> : vector<256x16xf32>
      %88 = tpu.matmul %85, %87, %cst_72 {dimension_numbers = #tpu.dot_dimension_numbers<[1], [0], [0], [1], [0, 0, 1, 1], [], []>} : vector<256x8xbf16>, vector<8x16xbf16>, vector<256x16xf32> -> vector<256x16xf32>
      %89 = arith.addf %83, %88 : vector<256x16xf32>
      %c0_73 = arith.constant 0 : index
      %c275 = arith.constant 275 : index
      %c0_74 = arith.constant 0 : index
      %90 = vector.load %arg11[%c0_73, %c275, %c0_74] : memref<1x768x8xbf16, #tpu.memory_space<vmem>>, vector<1x256x8xbf16>
      %91 = vector.shape_cast %90 : vector<1x256x8xbf16> to vector<256x8xbf16>
      %c8 = arith.constant 8 : index
      %c0_75 = arith.constant 0 : index
      %c0_76 = arith.constant 0 : index
      %92 = vector.load %arg9[%c8, %c0_75, %c0_76] : memref<9x8x16xbf16, #tpu.memory_space<vmem>>, vector<1x8x16xbf16>
      %93 = vector.shape_cast %92 : vector<1x8x16xbf16> to vector<8x16xbf16>
      %cst_77 = arith.constant dense<0.000000e+00> : vector<256x16xf32>
      %94 = tpu.matmul %91, %93, %cst_77 {dimension_numbers = #tpu.dot_dimension_numbers<[1], [0], [0], [1], [0, 0, 1, 1], [], []>} : vector<256x8xbf16>, vector<8x16xbf16>, vector<256x16xf32> -> vector<256x16xf32>
      %95 = arith.addf %89, %94 : vector<256x16xf32>
      %96 = arith.truncf %95 : vector<256x16xf32> to vector<256x16xbf16>
      %c0_78 = arith.constant 0 : index
      %c0_79 = arith.constant 0 : index
      %97 = vector.load %arg10[%c0_78, %c0_79] : memref<256x16xbf16, #tpu.memory_space<vmem>>, vector<256x16xbf16>
      tpu.vector_store %arg10[%c0_78, %c0_79], %96 {strides = array<i32>} : memref<256x16xbf16, #tpu.memory_space<vmem>>, vector<256x16xbf16>,
    } else {
    }
    %true = arith.constant true
    %5 = arith.xori %2, %true : i1
    %6 = arith.extui %5 : i1 to i32
    %c0_i32_1 = arith.constant 0 : i32
    %7 = arith.cmpi ne, %6, %c0_i32_1 : i32
    scf.if %7 {
      %cst = arith.constant 0.000000e+00 : bf16
      %8 = vector.broadcast %cst : bf16 to vector<256x16xbf16>
      %c0 = arith.constant 0 : index
      %c0_2 = arith.constant 0 : index
      %9 = vector.load %arg10[%c0, %c0_2] : memref<256x16xbf16, #tpu.memory_space<vmem>>, vector<256x16xbf16>
      tpu.vector_store %arg10[%c0, %c0_2], %8 {strides = array<i32>} : memref<256x16xbf16, #tpu.memory_space<vmem>>, vector<256x16xbf16>,
    } else {
    }
    return
  }
  func.func @transform_0(%arg0: i32) -> (i32, i32, i32) {
    %c-1_i32 = arith.constant -1 : i32
    %0 = arith.addi %arg0, %c-1_i32 : i32
    %c0_i32 = arith.constant 0 : i32
    %1 = arith.maxsi %0, %c0_i32 : i32
    %c0_i32_0 = arith.constant 0 : i32
    %c0_i32_1 = arith.constant 0 : i32
    %c0_i32_2 = arith.constant 0 : i32
    return %c0_i32_0, %1, %c0_i32_1 : i32, i32, i32
  }
  func.func @transform_1(%arg0: i32) -> (i32, i32, i32) {
    %c0_i32 = arith.constant 0 : i32
    %c0_i32_0 = arith.constant 0 : i32
    %c0_i32_1 = arith.constant 0 : i32
    return %c0_i32, %arg0, %c0_i32_0 : i32, i32, i32
  }
  func.func @transform_2(%arg0: i32) -> (i32, i32, i32) {
    %c1_i32 = arith.constant 1 : i32
    %0 = arith.addi %arg0, %c1_i32 : i32
    %c4_i32 = arith.constant 4 : i32
    %1 = arith.minsi %0, %c4_i32 : i32
    %c0_i32 = arith.constant 0 : i32
    %c0_i32_0 = arith.constant 0 : i32
    %c0_i32_1 = arith.constant 0 : i32
    return %c0_i32, %1, %c0_i32_0 : i32, i32, i32
  }
  func.func @transform_3(%arg0: i32) -> (i32, i32, i32) {
    %c-1_i32 = arith.constant -1 : i32
    %0 = arith.addi %arg0, %c-1_i32 : i32
    %c0_i32 = arith.constant 0 : i32
    %1 = arith.maxsi %0, %c0_i32 : i32
    %c0_i32_0 = arith.constant 0 : i32
    %c0_i32_1 = arith.constant 0 : i32
    %c0_i32_2 = arith.constant 0 : i32
    return %c0_i32_0, %1, %c0_i32_1 : i32, i32, i32
  }
  func.func @transform_4(%arg0: i32) -> (i32, i32, i32) {
    %c0_i32 = arith.constant 0 : i32
    %c0_i32_0 = arith.constant 0 : i32
    %c0_i32_1 = arith.constant 0 : i32
    return %c0_i32, %arg0, %c0_i32_0 : i32, i32, i32
  }
  func.func @transform_5(%arg0: i32) -> (i32, i32, i32) {
    %c1_i32 = arith.constant 1 : i32
    %0 = arith.addi %arg0, %c1_i32 : i32
    %c4_i32 = arith.constant 4 : i32
    %1 = arith.minsi %0, %c4_i32 : i32
    %c0_i32 = arith.constant 0 : i32
    %c0_i32_0 = arith.constant 0 : i32
    %c0_i32_1 = arith.constant 0 : i32
    return %c0_i32, %1, %c0_i32_0 : i32, i32, i32
  }
  func.func @transform_6(%arg0: i32) -> (i32, i32, i32) {
    %c0_i32 = arith.constant 0 : i32
    %c0_i32_0 = arith.constant 0 : i32
    %c0_i32_1 = arith.constant 0 : i32
    %c0_i32_2 = arith.constant 0 : i32
    return %c0_i32, %c0_i32_0, %c0_i32_1 : i32, i32, i32
  }
  func.func @transform_7(%arg0: i32) -> (i32, i32, i32) {
    %c0_i32 = arith.constant 0 : i32
    %c0_i32_0 = arith.constant 0 : i32
    %c0_i32_1 = arith.constant 0 : i32
    %c0_i32_2 = arith.constant 0 : i32
    return %c0_i32, %c0_i32_0, %c0_i32_1 : i32, i32, i32
  }
  func.func @transform_8(%arg0: i32) -> (i32, i32, i32) {
    %c0_i32 = arith.constant 0 : i32
    %c0_i32_0 = arith.constant 0 : i32
    %c0_i32_1 = arith.constant 0 : i32
    %c0_i32_2 = arith.constant 0 : i32
    return %c0_i32, %c0_i32_0, %c0_i32_1 : i32, i32, i32
  }
  func.func @transform_9(%arg0: i32) -> (i32, i32) {
    %c0_i32 = arith.constant 0 : i32
    %c0_i32_0 = arith.constant 0 : i32
    return %arg0, %c0_i32 : i32, i32
  }
}

</mosaic_0001>

<bundles_post_ra>
// kernel: tpu_custom_call.1
= control target key start
LH: loop header
LB: loop body
LE: loop exit
PB: predicated region body
PF: predicated region fallthrough
CT: control target
= control target key end

     0   :  { %s6294_s30 = smov 0   ;;  %s7747_s0 = inlined_call_operand.vmem [shape: bf16[1,1280,8], index: 0, kind: input, shape index: {}]   ;;  %s7748_s1 = inlined_call_operand.vmem [shape: bf16[1,1280,8], index: 1, kind: input, shape index: {}]   ;;  %s7749_s2 = inlined_call_operand.vmem [shape: bf16[1,1280,8], index: 2, kind: input, shape index: {}]   ;;  %s7750_s3 = inlined_call_operand.vmem [shape: f32[1,1280,1], index: 3, kind: input, shape index: {}]   ;;  %s7751_s4 = inlined_call_operand.vmem [shape: f32[1,1280,1], index: 4, kind: input, shape index: {}]   ;;  %s7752_s5 = inlined_call_operand.vmem [shape: f32[1,1280,1], index: 5, kind: input, shape index: {}]   ;;  %s7753_s6 = inlined_call_operand.vmem [shape: f32[1,1,8], index: 6, kind: input, shape index: {}]   ;;  %s7754_s7 = inlined_call_operand.vmem [shape: f32[1,1,8], index: 7, kind: input, shape index: {}]   ;;  %s7755_s8 = inlined_call_operand.vmem [shape: bf16[9,8,16], index: 8, kind: input, shape index: {}]   ;;  %s7756_s9 = inlined_call_operand.vmem [shape: bf16[1280,16], index: 9, kind: output, shape index: {}]  }
   0x1 LB: > { %s6300_s10 = sadd.s32 4294967295, %s6240_s30   ;;  %p5015_p0 = scmp.ge.s32.totalorder %s6240_s30, 1  ;;  %s6240_s30 = sphi %s6294_s30, %s19_s30  }
   0x2   : > { %p391_p1 = scmp.lt.s32.totalorder %s6240_s30, 6 }
   0x4   : > { %p392_p2 = pnand %p5015_p0, %p391_p1 }
   0x5   : > { %s464_s11 = sadd.s32 (!%p392_p2), 4294967295, %s6300_s10  ;;  %s5018_s12 = sshll.u32 (!%p392_p2), %s6300_s10, 5 }
   0x6   : > { %395 = sbr.rel (%p392_p2) target bundleno = 703 (0x2bf), region = 56  ;;  %p465_p3 = scmp.gt.s32.totalorder (!%p392_p2), %s464_s11, 0 }
   0x7   : > { %p477_p4 = scmp.lt.s32.totalorder (!%p392_p2), %s5018_s12, 159  ;;  %s482_s13 = sadd.s32 (!%p392_p2), 1, %s6300_s10 }
   0x8   : > { %p531_p5 = scmp.gt.s32.totalorder (!%p392_p2), %s6300_s10, 0  ;;  %p483_p6 = scmp.lt.s32.totalorder (!%p392_p2), %s482_s13, 4 }
   0x9   : > { %p532_p9 = scmp.lt.s32.totalorder (!%p392_p2), %s6300_s10, 4 }
   0xb   : > { %p6346_p10 = pnand (!%p392_p2), %p532_p9, %p531_p5 }
   0xd   : > { %s7840_s11 = smov (!%p465_p3, %s464_s11), 0  ;;  %s7842_s12 = smov (!%p477_p4, %s5018_s12), 159 }
   0xe   : > { %s5016_s14 = sshll.u32 %s7840_s11, 5  ;;  %s5019_s15 = sshll.u32 %s7842_s12, 2 }
   0xf   : > { %p468_p7 = scmp.lt.s32.totalorder %s5016_s14, 159  ;;  %s6311_s18 = scalar_lea.vmem %s7748_s1, %s5019_s15 }
  0x10   : > { %s5025_s19 = sshll.u32 %s7842_s12, 3  ;;  %s7846_s13 = smov (!%p483_p6, %s482_s13), 4 }
  0x11   : > { %s7844_s14 = smov (!%p468_p7, %s5016_s14), 159  ;;  %s5020_s25 = sshll.u32 %s7846_s13, 5 }
  0x12   : > { %s5017_s20 = sshll.u32 %s7844_s14, 2  ;;  %s5023_s21 = sshll.u32 %s7844_s14, 3 }
  0x13   : > { %s6316_s24 = scalar_lea.vmem %s7747_s0, %s5017_s20  ;;  %p486_p8 = scmp.lt.s32.totalorder %s5020_s25, 159 }
  0x14   : > { %s6321_s28 = scalar_lea.vmem %s7750_s3, %s5023_s21  ;;  %s6326_s12 = scalar_lea.vmem %s7751_s4, %s5025_s19 }
  0x15   : > { %s6331_s14 = scalar_lea.vmem %s7756_s9, %s5019_s15  ;;  %s7848_s25 = smov (!%p486_p8, %s5020_s25), 159 }
  0x16   : > { %s5021_s20 = sshll.u32 %s7848_s25, 2  ;;  %s5027_s13 = sshll.u32 %s7848_s25, 3 }
  0x17   : > { %s6337_s26 = scalar_lea.vmem %s7749_s2, %s5021_s20  ;;  %s6342_s29 = scalar_lea.vmem %s7752_s5, %s5027_s13 }
  0x18   : > { %536 = sbr.rel (%p6346_p10) target bundleno = 686 (0x2ae), region = 60 }
  0x1f   : > { %v709_v0 = vld [vmem:[%s6321_s28 + $0xf0] sm:$0xff]  ;;  %v707_v1 = vld [vmem:[%s6321_s28 + $0xe0] sm:$0xff]  ;;  %v6242_v2 = vmov 0   ;;  %v710_v3 = vld [vmem:[%s6321_s28 + $0xf8] sm:$0xff]  ;;  %vm1824_vm0 = vcmask 1043456   ;;  %vm919_vm1 = vcmask 64512  }
  0x20   : > { %6225 = vset.pattern.permute.xlu1 %v6242_v2  ;;  %6224 = vset.pattern.permute.xlu0 %v6242_v2  ;;  %v708_v4 = vld [vmem:[%s6321_s28 + $0xe8] sm:$0xff]  ;;  %v1064_v6 = vld [vmem:[%s6326_s12] sm:$0xff]  ;;  %v1067_v7 = vld [vmem:[%s6326_s12 + $0x18] sm:$0xff]  ;;  %vm1742_vm2 = vcmask 1040384   ;;  %vm3303_vm3 = vsmask.f32 7424 }
  0x21   : > { %863 = vperm.xlu1 %6225, %v709_v0   ;;  %853 = vperm.xlu0 %6224, %v707_v1   ;;  %v1065_v5 = vld [vmem:[%s6326_s12 + $0x8] sm:$0xff]  ;;  %v1066_v8 = vld [vmem:[%s6326_s12 + $0x10] sm:$0xff]  ;;  %v1068_v10 = vld [vmem:[%s6326_s12 + $0x20] sm:$0xff]  ;;  %vm1989_vm4 = vsmask.f32 1280  ;;  %vm4095_vm6 = vcmask 1046528  }
  0x22   : > { %v1069_v9 = vld [vmem:[%s6326_s12 + $0x28] sm:$0xff]  ;;  %v1071_v11 = vld [vmem:[%s6326_s12 + $0x38] sm:$0xff]  ;;  %v1070_v12 = vld [vmem:[%s6326_s12 + $0x30] sm:$0xff]  ;;  %vm2357_vm5 = vsmask.f32 256  ;;  %vm4826_vm8 = vcmask 125952  }
  0x23   : > { %v1073_v13 = vld [vmem:[%s6326_s12 + $0x48] sm:$0xff]  ;;  %v1072_v14 = vld [vmem:[%s6326_s12 + $0x40] sm:$0xff]  ;;  %v1075_v15 = vld [vmem:[%s6326_s12 + $0x58] sm:$0xff]  ;;  %vm4376_vm7 = vsmask.f32 6400 }
  0x24   : > { %v1074_v16 = vld [vmem:[%s6326_s12 + $0x50] sm:$0xff]  ;;  %v5032_v17 = vld [vmem:[%s7755_s8 + $0x4] sm:$0xf]  ;;  %v6379_v19 = vld [vmem:[%s7755_s8] sm:$0xf] }
  0x25   : > { %868 = vperm.xlu1 %6225, %v710_v3   ;;  %858 = vperm.xlu0 %6224, %v708_v4   ;;  %v5099_v18 = vld [vmem:[%s7755_s8 + $0x10] sm:$0xf]  ;;  %v1826_v20 = vsel %vm1824_vm0, %v5032_v17, 0  ;;  %v1077_v21 = vld [vmem:[%s6326_s12 + $0x68] sm:$0xff]  ;;  %v1076_v22 = vld [vmem:[%s6326_s12 + $0x60] sm:$0xff] }
  0x26   : > { %6204 = vmatprep.subr.msk.bf16.mxu1 %vm1824_vm0, %v5032_v17  ;;  %6208 = vmatprep.subr.msk.bf16.mxu0 %vm1824_vm0, %v5099_v18  ;;  %v6385_v23 = vsel %vm1824_vm0, %v5099_v18, 0  ;;  %v6392_v24 = vld [vmem:[%s7755_s8 + $0x14] sm:$0xf]  ;;  %v1079_v25 = vld [vmem:[%s6326_s12 + $0x78] sm:$0xff]  ;;  %v1081_v27 = vld [vmem:[%s6326_s12 + $0x88] sm:$0xff] }
  0x27   : > { %5641 = vmatpush3.bf16.msra.mxu1 %v1826_v20  ;;  %7795 = vst [vmem:[#allocation3_spill] sm:$0xff] %v6385_v23  ;;  %5777 = vmatpush3.bf16.msra.mxu0 %v6385_v23  ;;  %v1078_v26 = vld [vmem:[%s6326_s12 + $0x70] sm:$0xff]  ;;  %v1080_v28 = vld [vmem:[%s6326_s12 + $0x80] sm:$0xff]  ;;  %v1083_v29 = vld [vmem:[%s6326_s12 + $0x98] sm:$0xff] }
  0x28   : > { %6205 = vmatprep.subr.msk.bf16.mxu1 %vm1824_vm0, %v6379_v19  ;;  %6210 = vmatprep.subr.msk.bf16.mxu0 %vm1824_vm0, %v6392_v24  ;;  %v1082_v30 = vld [vmem:[%s6326_s12 + $0x90] sm:$0xff]  ;;  %v1085_v31 = vld [vmem:[%s6326_s12 + $0xa8] sm:$0xff]  ;;  %v1084_v32 = vld [vmem:[%s6326_s12 + $0xa0] sm:$0xff] }
  0x29   : > { %1103 = vperm.xlu1 %6225, %v1065_v5   ;;  %1098 = vperm.xlu0 %6224, %v1064_v6   ;;  %v1087_v33 = vld [vmem:[%s6326_s12 + $0xb8] sm:$0xff]  ;;  %v1086_v34 = vld [vmem:[%s6326_s12 + $0xb0] sm:$0xff]  ;;  %v1089_v35 = vld [vmem:[%s6326_s12 + $0xc8] sm:$0xff] }
  0x2a   : > { %v1088_v36 = vld [vmem:[%s6326_s12 + $0xc0] sm:$0xff]  ;;  %v1091_v37 = vld [vmem:[%s6326_s12 + $0xd8] sm:$0xff]  ;;  %v1090_v38 = vld [vmem:[%s6326_s12 + $0xd0] sm:$0xff] }
  0x2b   : > { %v1093_v39 = vld [vmem:[%s6326_s12 + $0xe8] sm:$0xff]  ;;  %v1092_v40 = vld [vmem:[%s6326_s12 + $0xe0] sm:$0xff]  ;;  %v1095_v41 = vld [vmem:[%s6326_s12 + $0xf8] sm:$0xff] }
  0x2c   : > { %v1094_v42 = vld [vmem:[%s6326_s12 + $0xf0] sm:$0xff]  ;;  %v1449_v43 = vld [vmem:[%s6342_s29 + $0x8] sm:$0xff]  ;;  %v1448_v44 = vld [vmem:[%s6342_s29] sm:$0xff] }
  0x2d   : > { %1113 = vperm.xlu1 %6225, %v1067_v7   ;;  %1108 = vperm.xlu0 %6224, %v1066_v8   ;;  %v1451_v45 = vld [vmem:[%s6342_s29 + $0x18] sm:$0xff]  ;;  %v1450_v46 = vld [vmem:[%s6342_s29 + $0x10] sm:$0xff]  ;;  %v680_v47 = vld [vmem:[%s6321_s28 + $0x8] sm:$0xff] }
  0x2e   : > { %v679_v48 = vld [vmem:[%s6321_s28] sm:$0xff]  ;;  %v682_v49 = vld [vmem:[%s6321_s28 + $0x18] sm:$0xff]  ;;  %v681_v50 = vld [vmem:[%s6321_s28 + $0x10] sm:$0xff] }
  0x2f   : > { %v684_v51 = vld [vmem:[%s6321_s28 + $0x28] sm:$0xff]  ;;  %v683_v52 = vld [vmem:[%s6321_s28 + $0x20] sm:$0xff]  ;;  %v686_v53 = vld [vmem:[%s6321_s28 + $0x38] sm:$0xff] }
  0x30   : > { %v685_v54 = vld [vmem:[%s6321_s28 + $0x30] sm:$0xff]  ;;  %v688_v55 = vld [vmem:[%s6321_s28 + $0x48] sm:$0xff]  ;;  %v687_v56 = vld [vmem:[%s6321_s28 + $0x40] sm:$0xff] }
  0x31   : > { %1123 = vperm.xlu1 %6225, %v1069_v9   ;;  %1118 = vperm.xlu0 %6224, %v1068_v10   ;;  %v690_v57 = vld [vmem:[%s6321_s28 + $0x58] sm:$0xff]  ;;  %v689_v58 = vld [vmem:[%s6321_s28 + $0x50] sm:$0xff]  ;;  %v692_v59 = vld [vmem:[%s6321_s28 + $0x68] sm:$0xff] }
  0x32   : > { %v691_v60 = vld [vmem:[%s6321_s28 + $0x60] sm:$0xff]  ;;  %v694_v61 = vld [vmem:[%s6321_s28 + $0x78] sm:$0xff]  ;;  %v693_v62 = vld [vmem:[%s6321_s28 + $0x70] sm:$0xff] }
  0x33   : > { %v696_v63 = vld [vmem:[%s6321_s28 + $0x88] sm:$0xff]  ;;  %v695_v0 = vld [vmem:[%s6321_s28 + $0x80] sm:$0xff]  ;;  %v698_v1 = vld [vmem:[%s6321_s28 + $0x98] sm:$0xff] }
  0x34   : > { %v697_v2 = vld [vmem:[%s6321_s28 + $0x90] sm:$0xff]  ;;  %v5456_v3 = vld [vmem:[%s6316_s24 + $0x78] sm:$0xff]   ;;  %v700_v4 = vld [vmem:[%s6321_s28 + $0xa8] sm:$0xff] }
  0x35   : > { %1133 = vperm.xlu1 %6225, %v1071_v11   ;;  %1128 = vperm.xlu0 %6224, %v1070_v12   ;;  %v699_v5 = vld [vmem:[%s6321_s28 + $0xa0] sm:$0xff]  ;;  %v5455_v6 = vld [vmem:[%s6316_s24 + $0x70] sm:$0xff]   ;;  %v5457_v8 = vld [vmem:[%s6311_s18 + $0x8] sm:$0xff]   ;;  %v5312_v9 = vunpack.c.l.bf16 %v5456_v3 }
  0x36   : > { %v5315_v7 = vld [vmem:[%s6311_s18] sm:$0xff]   ;;  %v5458_v10 = vld [vmem:[%s6311_s18 + $0x10] sm:$0xff]   ;;  %v5308_v12 = vunpack.c.l.bf16 %v5455_v6  ;;  %v5321_v20 = vunpack.c.h.bf16 %v5457_v8 }
  0x37   : > { %v6449_v11 = vld [vmem:[%s7753_s6] ss:$0 sm:$0xff]  ;;  %v5317_v17 = vunpack.c.h.bf16 %v5315_v7  ;;  %v5316_v18 = vunpack.c.l.bf16 %v5315_v7 }
  0x39   : > { %1143 = vperm.xlu1 %6225, %v1073_v13   ;;  %1138 = vperm.xlu0 %6224, %v1072_v14   ;;  %v5313_v13 = vunpack.c.h.bf16 %v5456_v3  ;;  %v5309_v14 = vunpack.c.h.bf16 %v5455_v6 }
  0x3d   : > { %1153 = vperm.xlu1 %6225, %v1075_v15   ;;  %1148 = vperm.xlu0 %6224, %v1074_v16   ;;  %v702_v15 = vld [vmem:[%s6321_s28 + $0xb8] sm:$0xff]  ;;  %v701_v16 = vld [vmem:[%s6321_s28 + $0xb0] sm:$0xff] }
  0x41   : > { %1163 = vperm.xlu1 %6225, %v1077_v21   ;;  %1158 = vperm.xlu0 %6224, %v1076_v22   ;;  %v5320_v21 = vunpack.c.l.bf16 %v5457_v8  ;;  %v5325_v22 = vunpack.c.h.bf16 %v5458_v10 }
  0x45   : > { %1173 = vperm.xlu1 %6225, %v1079_v25   ;;  %1168 = vperm.xlu0 %6224, %v1078_v26   ;;  %v639_v25 = vmul.f32 %v5312_v9, %v6449_v11  ;;  %v5324_v26 = vunpack.c.l.bf16 %v5458_v10  ;;  %v1453_v10 = vld [vmem:[%s6342_s29 + $0x28] sm:$0xff] }
  0x49   : > { %1183 = vperm.xlu1 %6225, %v1081_v27   ;;  %1178 = vperm.xlu0 %6224, %v1080_v28   ;;  %v5459_v27 = vld [vmem:[%s6311_s18 + $0x18] sm:$0xff]   ;;  %v6458_v28 = vld [vmem:[%s7754_s7] ss:$0 sm:$0xff] }
  0x4d   : > { %1193 = vperm.xlu1 %6225, %v1083_v29   ;;  %1188 = vperm.xlu0 %6224, %v1082_v30   ;;  %v637_v29 = vmul.f32 %v5308_v12, %v6449_v11  ;;  %v640_v30 = vmul.f32 %v5313_v13, %v6449_v11  ;;  %v1452_v12 = vld [vmem:[%s6342_s29 + $0x20] sm:$0xff] }
  0x51   : > { %1203 = vperm.xlu1 %6225, %v1085_v31   ;;  %1198 = vperm.xlu0 %6224, %v1084_v32   ;;  %v638_v31 = vmul.f32 %v5309_v14, %v6449_v11  ;;  %v5460_v32 = vld [vmem:[%s6311_s18 + $0x20] sm:$0xff]  }
  0x55   : > { %1213 = vperm.xlu1 %6225, %v1087_v33   ;;  %1208 = vperm.xlu0 %6224, %v1086_v34   ;;  %v704_v33 = vld [vmem:[%s6321_s28 + $0xc8] sm:$0xff]  ;;  %v703_v34 = vld [vmem:[%s6321_s28 + $0xc0] sm:$0xff] }
  0x59   : > { %1223 = vperm.xlu1 %6225, %v1089_v35   ;;  %1218 = vperm.xlu0 %6224, %v1088_v36   ;;  %v1001_v35 = vmul.f32 %v5317_v17, %v6449_v11  ;;  %v1000_v36 = vmul.f32 %v5316_v18, %v6449_v11 }
  0x5d   : > { %1233 = vperm.xlu1 %6225, %v1091_v37   ;;  %1228 = vperm.xlu0 %6224, %v1090_v38   ;;  %v1003_v37 = vmul.f32 %v5321_v20, %v6449_v11  ;;  %v1002_v38 = vmul.f32 %v5320_v21, %v6449_v11 }
  0x61   : > { %1243 = vperm.xlu1 %6225, %v1093_v39   ;;  %1238 = vperm.xlu0 %6224, %v1092_v40   ;;  %v1005_v39 = vmul.f32 %v5325_v22, %v6449_v11  ;;  %v5329_v40 = vunpack.c.h.bf16 %v5459_v27 }
  0x65   : > { %1253 = vperm.xlu1 %6225, %v1095_v41   ;;  %1248 = vperm.xlu0 %6224, %v1094_v42   ;;  %v5328_v41 = vunpack.c.l.bf16 %v5459_v27 }
  0x69   : > { %1487 = vperm.xlu1 %6225, %v1449_v43   ;;  %1482 = vperm.xlu0 %6224, %v1448_v44   ;;  %v677_v43 = vadd.f32 %v6458_v28, %v639_v25 }
  0x6d   : > { %1497 = vperm.xlu1 %6225, %v1451_v45   ;;  %1492 = vperm.xlu0 %6224, %v1450_v46   ;;  %v1004_v45 = vmul.f32 %v5324_v26, %v6449_v11  ;;  %v5333_v46 = vunpack.c.h.bf16 %v5460_v32 }
  0x6f   : > { %v1009_v3 = vmul.f32 %v5333_v46, %v6449_v11 }
  0x71   : > { %718 = vperm.xlu1 %6225, %v680_v47   ;;  %713 = vperm.xlu0 %6224, %v679_v48   ;;  %v675_v47 = vadd.f32 %v6458_v28, %v637_v29  ;;  %v678_v48 = vadd.f32 %v6458_v28, %v640_v30  ;;  %v6512_v29 = vadd.f32 %v6458_v28, %v1009_v3 }
  0x75   : > { %728 = vperm.xlu1 %6225, %v682_v49   ;;  %723 = vperm.xlu0 %6224, %v681_v50   ;;  %v676_v49 = vadd.f32 %v6458_v28, %v638_v31  ;;  %v5461_v50 = vld [vmem:[%s6311_s18 + $0x28] sm:$0xff]  }
  0x76   : > { %v5336_v9 = vunpack.c.l.bf16 %v5461_v50 }
  0x79   : > { %738 = vperm.xlu1 %6225, %v684_v51   ;;  %733 = vperm.xlu0 %6224, %v683_v52   ;;  %v706_v51 = vld [vmem:[%s6321_s28 + $0xd8] sm:$0xff]  ;;  %v705_v52 = vld [vmem:[%s6321_s28 + $0xd0] sm:$0xff] }
  0x7d   : > { %748 = vperm.xlu1 %6225, %v686_v53   ;;  %743 = vperm.xlu0 %6224, %v685_v54   ;;  %v1033_v53 = vadd.f32 %v6458_v28, %v1001_v35  ;;  %v1032_v54 = vadd.f32 %v6458_v28, %v1000_v36  ;;  %v5466_v35 = vld [vmem:[%s6311_s18 + $0x50] sm:$0xff]   ;;  %v1455_v36 = vld [vmem:[%s6342_s29 + $0x38] sm:$0xff] }
  0x7e   : > { %v5356_v3 = vunpack.c.l.bf16 %v5466_v35 }
  0x81   : > { %758 = vperm.xlu1 %6225, %v688_v55   ;;  %753 = vperm.xlu0 %6224, %v687_v56   ;;  %v6482_v55 = vadd.f32 %v6458_v28, %v1003_v37  ;;  %v5332_v56 = vunpack.c.l.bf16 %v5460_v32  ;;  %v1454_v37 = vld [vmem:[%s6342_s29 + $0x30] sm:$0xff] }
  0x83   : > { %v1008_v13 = vmul.f32 %v5332_v56, %v6449_v11 }
  0x85   : > { %768 = vperm.xlu1 %6225, %v690_v57   ;;  %763 = vperm.xlu0 %6224, %v689_v58   ;;  %v6485_v57 = vadd.f32 %v6458_v28, %v1002_v38  ;;  %v6488_v58 = vadd.f32 %v6458_v28, %v1005_v39 }
  0x89   : > { %778 = vperm.xlu1 %6225, %v692_v59   ;;  %773 = vperm.xlu0 %6224, %v691_v60   ;;  %v1007_v59 = vmul.f32 %v5329_v40, %v6449_v11  ;;  %v1006_v60 = vmul.f32 %v5328_v41, %v6449_v11 }
  0x8b   : > { %v6506_v26 = vadd.f32 %v6458_v28, %v1007_v59  ;;  %v6509_v27 = vadd.f32 %v6458_v28, %v1006_v60  ;;  %v5467_v59 = vld [vmem:[%s6311_s18 + $0x58] sm:$0xff]   ;;  %v1457_v60 = vld [vmem:[%s6342_s29 + $0x48] sm:$0xff] }
  0x8d   : > { %788 = vperm.xlu1 %6225, %v694_v61   ;;  %783 = vperm.xlu0 %6224, %v693_v62   ;;  %v5462_v61 = vld [vmem:[%s6311_s18 + $0x30] sm:$0xff]   ;;  %v5463_v62 = vld [vmem:[%s6311_s18 + $0x38] sm:$0xff]  }
  0x8e   : > { %v5341_v14 = vunpack.c.h.bf16 %v5462_v61  ;;  %v5344_v20 = vunpack.c.l.bf16 %v5463_v62 }
  0x90   : > { %v1013_v38 = vmul.f32 %v5341_v14, %v6449_v11  ;;  %v5469_v14 = vld [vmem:[%s6311_s18 + $0x68] sm:$0xff]  }
  0x91   : > { %798 = vperm.xlu1 %6225, %v696_v63   ;;  %793 = vperm.xlu0 %6224, %v695_v0  }
  0x95   : > { %808 = vperm.xlu1 %6225, %v698_v1   ;;  %803 = vperm.xlu0 %6224, %v697_v2   ;;  %v6495_v2 = vadd.f32 %v6458_v28, %v1004_v45 }
  0x99   : > { %818 = vperm.xlu1 %6225, %v700_v4   ;;  %813 = vperm.xlu0 %6224, %v699_v5   ;;  %v5337_v4 = vunpack.c.h.bf16 %v5461_v50  ;;  %v6499_v5 = vld [vmem:[%s6311_s18 + $0x40] sm:$0xff]  }
  0x9a   : > { %v5349_v21 = vunpack.c.h.bf16 %v6499_v5  ;;  %v5348_v41 = vunpack.c.l.bf16 %v6499_v5 }
  0x9b   : > { %v1011_v30 = vmul.f32 %v5337_v4, %v6449_v11  ;;  %v5468_v4 = vld [vmem:[%s6311_s18 + $0x60] sm:$0xff]  }
  0x9c   : > { %v1017_v45 = vmul.f32 %v5349_v21, %v6449_v11  ;;  %v1458_v21 = vld [vmem:[%s6342_s29 + $0x50] sm:$0xff] }
  0x9d   : > { %828 = vperm.xlu1 %6225, %v702_v15   ;;  %823 = vperm.xlu0 %6224, %v701_v16   ;;  %v5340_v15 = vunpack.c.l.bf16 %v5462_v61  ;;  %v5345_v16 = vunpack.c.h.bf16 %v5463_v62  ;;  %v1456_v61 = vld [vmem:[%s6342_s29 + $0x40] sm:$0xff]  ;;  %v6548_v62 = vadd.f32 %v6458_v28, %v1013_v38 }
  0x9f   : > { %v1012_v39 = vmul.f32 %v5340_v15, %v6449_v11  ;;  %v1015_v40 = vmul.f32 %v5345_v16, %v6449_v11 }
  0xa0   : > { %v864_v42 = vpop.permute.xlu1 %863  ;;  %v854_v44 = vpop.permute.xlu0 %853 }
  0xa1   : > { %838 = vperm.xlu1 %6225, %v704_v33   ;;  %833 = vperm.xlu0 %6224, %v703_v34   ;;  %v901_v63 = vmul.f32 %v864_v42, %v677_v43  ;;  %v899_v6 = vmul.f32 %v854_v44, %v675_v47  ;;  %v1010_v33 = vmul.f32 %v5336_v9, %v6449_v11  ;;  %v5465_v34 = vld [vmem:[%s6311_s18 + $0x48] sm:$0xff]  }
  0xa2   : > { %v6527_v43 = vadd.f32 %v6458_v28, %v1008_v13  ;;  %v1014_v44 = vmul.f32 %v5344_v20, %v6449_v11  ;;  %v5352_v50 = vunpack.c.l.bf16 %v5465_v34  ;;  %v5361_v13 = vunpack.c.h.bf16 %v5467_v59  ;;  %v1459_v20 = vld [vmem:[%s6342_s29 + $0x58] sm:$0xff] }
  0xa3   : > { %v6542_v56 = vadd.f32 %v6458_v28, %v1010_v33 }
  0xa4   : > { %v869_v0 = vpop.permute.xlu1 %868  ;;  %v859_v1 = vpop.permute.xlu0 %858 }
  0xa5   : > { %v902_v7 = vmul.f32 %v869_v0, %v678_v48  ;;  %v900_v8 = vmul.f32 %v859_v1, %v676_v49  ;;  %848 = vperm.xlu1 %6225, %v706_v51   ;;  %843 = vperm.xlu0 %6224, %v705_v52   ;;  %v6532_v48 = vadd.f32 %v6458_v28, %v1011_v30  ;;  %v5353_v49 = vunpack.c.h.bf16 %v5465_v34 }
  0xa6   : > { %v5357_v51 = vunpack.c.h.bf16 %v5466_v35  ;;  %v6558_v0 = vadd.f32 %v6458_v28, %v1014_v44  ;;  %v6561_v1 = vadd.f32 %v6458_v28, %v1017_v45  ;;  %v5365_v30 = vunpack.c.h.bf16 %v5468_v4 }
  0xa7   : > { %v918_v17 = vpack.c.bf16 %v902_v7, %v901_v63  ;;  %v917_v18 = vpack.c.bf16 %v900_v8, %v899_v6  ;;  %v1016_v63 = vmul.f32 %v5348_v41, %v6449_v11  ;;  %v1019_v9 = vmul.f32 %v5353_v49, %v6449_v11 }
  0xa8   : > { %v1104_v22 = vpop.permute.xlu1 %1103  ;;  %v1099_v25 = vpop.permute.xlu0 %1098  ;;  %v5369_v34 = vunpack.c.h.bf16 %v5469_v14  ;;  %v5368_v41 = vunpack.c.l.bf16 %v5469_v14  ;;  %v3485_v14 = vsel %vm1824_vm0, %v6392_v24, 0 }
  0xa9   : > { %935 = vst.msk [vmem:[#allocation2 + $0x78] sm:$0xff] %vm919_vm1, %v918_v17  ;;  %934 = vst.msk [vmem:[#allocation2 + $0x70] sm:$0xff] %vm919_vm1, %v917_v18  ;;  %v1257_v31 = vmul.f32 %v1104_v22, %v1033_v53  ;;  %v1256_v32 = vmul.f32 %v1099_v25, %v1032_v54  ;;  %1507 = vperm.xlu1 %6225, %v1453_v10   ;;  %1502 = vperm.xlu0 %6224, %v1452_v12   ;;  %v6539_v54 = vsel %vm1824_vm0, %v6379_v19, 0 }
  0xaa   : > { %v1018_v10 = vmul.f32 %v5352_v50, %v6449_v11  ;;  %v1021_v12 = vmul.f32 %v5357_v51, %v6449_v11  ;;  %v6580_v22 = vadd.f32 %v6458_v28, %v1016_v63  ;;  %v5360_v25 = vunpack.c.l.bf16 %v5467_v59  ;;  %v1461_v50 = vld [vmem:[%s6342_s29 + $0x68] sm:$0xff] }
  0xab   : > { %v1288_v42 = vpack.c.bf16 %v1257_v31, %v1256_v32  ;;  %v5364_v31 = vunpack.c.l.bf16 %v5468_v4  ;;  %v5470_v32 = vld [vmem:[%s6311_s18 + $0x70] sm:$0xff]   ;;  %v6589_v38 = vadd.f32 %v6458_v28, %v1019_v9 }
  0xac   : > { %v1114_v46 = vpop.permute.xlu1 %1113  ;;  %v1109_v47 = vpop.permute.xlu0 %1108  ;;  %v6599_v45 = vadd.f32 %v6458_v28, %v1021_v12  ;;  %v1022_v51 = vmul.f32 %v5360_v25, %v6449_v11 }
  0xad   : > { %1304 = vst.msk [vmem:[#allocation2 + $0x80] sm:$0xff] %vm919_vm1, %v1288_v42  ;;  %v1259_v52 = vmul.f32 %v1114_v46, %v6482_v55  ;;  %v1258_v53 = vmul.f32 %v1109_v47, %v6485_v57  ;;  %1517 = vperm.xlu1 %6225, %v1455_v36   ;;  %1512 = vperm.xlu0 %6224, %v1454_v37   ;;  %v5373_v46 = vunpack.c.h.bf16 %v5470_v32  ;;  %v6602_v47 = vld [vmem:[%s6311_s18 + $0x78] sm:$0xff]  }
  0xae   : > { %v6551_v55 = vadd.f32 %v6458_v28, %v1012_v39  ;;  %v6554_v57 = vadd.f32 %v6458_v28, %v1015_v40  ;;  %v6592_v39 = vadd.f32 %v6458_v28, %v1018_v10  ;;  %v1023_v40 = vmul.f32 %v5361_v13, %v6449_v11  ;;  %v6627_v10 = vld [vmem:[%s7755_s8 + $0x8] sm:$0xf] }
  0xaf   : > { %v1289_v19 = vpack.c.bf16 %v1259_v52, %v1258_v53  ;;  %v1460_v53 = vld [vmem:[%s6342_s29 + $0x60] sm:$0xff]  ;;  %v5377_v9 = vunpack.c.h.bf16 %v6602_v47 }
  0xb0   : > { %v1124_v5 = vpop.permute.xlu1 %1123  ;;  %v1119_v6 = vpop.permute.xlu0 %1118  ;;  %v6564_v7 = vld [vmem:[#allocation2 + $0x78] sm:$0xff]  ;;  %v6566_v8 = vld [vmem:[#allocation2 + $0x70] sm:$0x80] }
  0xb1   : > { %1305 = vst.msk [vmem:[#allocation2 + $0x88] sm:$0xff] %vm919_vm1, %v1289_v19  ;;  %v1261_v15 = vmul.f32 %v1124_v5, %v6488_v58  ;;  %v1260_v16 = vmul.f32 %v1119_v6, %v6495_v2  ;;  %1527 = vperm.xlu1 %6225, %v1457_v60   ;;  %1522 = vperm.xlu0 %6224, %v1456_v61   ;;  %v1743_v17 = vrot.slane %v6566_v8, 7  ;;  %v1744_v18 = vrot.slane %v6564_v7, 7 }
  0xb2   : > { %v1020_v2 = vmul.f32 %v5356_v3, %v6449_v11  ;;  %v1027_v60 = vmul.f32 %v5369_v34, %v6449_v11  ;;  %v5372_v61 = vunpack.c.l.bf16 %v5470_v32  ;;  %v6620_v5 = vadd.f32 %v6458_v28, %v1023_v40  ;;  %v5133_v34 = vld [vmem:[%s7755_s8 + $0x18] sm:$0xf] }
  0xb3   : > { %v1290_v33 = vpack.c.bf16 %v1261_v15, %v1260_v16  ;;  %v1745_v58 = vsel %vm1742_vm2, %v1743_v17, %v1744_v18  ;;  %v1026_v6 = vmul.f32 %v5368_v41, %v6449_v11  ;;  %v1029_v15 = vmul.f32 %v5373_v46, %v6449_v11  ;;  %v5379_v16 = vld [vmem:[%s6337_s26] sm:$0xff]  }
  0xb4   : > { %v1134_v35 = vpop.permute.xlu1 %1133  ;;  %v1129_v36 = vpop.permute.xlu0 %1128  ;;  %5642 = vmatprep.mubr.msk.bf16.mxu1 %vm919_vm1, %v1745_v58  ;;  %v6586_v37 = vld [vmem:[#allocation2 + $0x80] sm:$0xff]  ;;  %v6613_v59 = vadd.f32 %v6458_v28, %v1020_v2  ;;  %v6653_v25 = vadd.f32 %v6458_v28, %v1027_v60  ;;  %v5381_v40 = vunpack.c.h.bf16 %v5379_v16  ;;  %v5380_v46 = vunpack.c.l.bf16 %v5379_v16 }
  0xb5   : > { %1306 = vst.msk [vmem:[#allocation2 + $0x90] sm:$0xff] %vm919_vm1, %v1290_v33  ;;  %v1263_v42 = vmul.f32 %v1134_v35, %v6506_v26  ;;  %v1262_v44 = vmul.f32 %v1129_v36, %v6509_v27  ;;  %1537 = vperm.xlu1 %6225, %v1459_v20   ;;  %1532 = vperm.xlu0 %6224, %v1458_v21   ;;  %v1746_v49 = vrot.slane %v6586_v37, 7  ;;  %v1462_v21 = vld [vmem:[%s6342_s29 + $0x70] sm:$0xff] }
  0xb6   : > { %5778 = vmatprep.mubr.msk.bf16.mxu0 %vm919_vm1, %v6586_v37  ;;  %v1025_v26 = vmul.f32 %v5365_v30, %v6449_v11  ;;  %v1024_v27 = vmul.f32 %v5364_v31, %v6449_v11  ;;  %v5376_v30 = vunpack.c.l.bf16 %v6602_v47  ;;  %v5472_v31 = vld [vmem:[%s6337_s26 + $0x8] sm:$0xff]   ;;  %v6667_v35 = vadd.f32 %v6458_v28, %v1026_v6 }
  0xb7   : > { %v1291_v52 = vpack.c.bf16 %v1263_v42, %v1262_v44  ;;  %v1747_v3 = vsel %vm1742_vm2, %v1744_v18, %v1746_v49  ;;  %v1463_v18 = vld [vmem:[%s6342_s29 + $0x78] sm:$0xff]  ;;  %v1031_v36 = vmul.f32 %v5377_v9, %v6449_v11  ;;  %v6675_v44 = vadd.f32 %v6458_v28, %v1029_v15 }
  0xb8   : > { %v1144_v63 = vpop.permute.xlu1 %1143  ;;  %v1139_v19 = vpop.permute.xlu0 %1138  ;;  %v6617_v4 = vld [vmem:[#allocation2 + $0x88] sm:$0xff]  ;;  %5643 = vmatmul.mubr.msk.bf16.vlgmr.msra.gmra.mrb[0].mxu1 %vm919_vm1, %v1747_v3  ;;  %v6647_v20 = vadd.f32 %v6458_v28, %v1024_v27  ;;  %v1030_v27 = vmul.f32 %v5376_v30, %v6449_v11  ;;  %v6699_v9 = vsel %vm1824_vm0, %v5133_v34, 0 }
  0xb9   : > { %1307 = vst.msk [vmem:[#allocation2 + $0x98] sm:$0xff] %vm919_vm1, %v1291_v52  ;;  %v1265_v12 = vmul.f32 %v1144_v63, %v6512_v29  ;;  %v1264_v13 = vmul.f32 %v1139_v19, %v6527_v43  ;;  %1547 = vperm.xlu1 %6225, %v1461_v50   ;;  %1542 = vperm.xlu0 %6224, %v1460_v53   ;;  %v1748_v17 = vrot.slane %v6617_v4, 7  ;;  %v5385_v50 = vunpack.c.h.bf16 %v5472_v31 }
  0xba   : > { %5675 = vmatpush3.bf16.msra.mxu1 %v6539_v54  ;;  %v6641_v29 = vadd.f32 %v6458_v28, %v1022_v51  ;;  %v6644_v43 = vadd.f32 %v6458_v28, %v1025_v26  ;;  %5779 = vmatmul.mubr.msk.bf16.vlgmr.msra.gmra.mrb[0].mxu0 %vm919_vm1, %v6617_v4  ;;  %v1028_v54 = vmul.f32 %v5372_v61, %v6449_v11  ;;  %v5384_v51 = vunpack.c.l.bf16 %v5472_v31 }
  0xbb   : > { %v1292_v24 = vpack.c.bf16 %v1265_v12, %v1264_v13  ;;  %6206 = vmatprep.subr.msk.bf16.mxu1 %vm1824_vm0, %v6627_v10  ;;  %5811 = vmatpush3.bf16.msra.mxu0 %v3485_v14  ;;  %v1749_v58 = vsel %vm1742_vm2, %v1746_v49, %v1748_v17  ;;  %v1465_v49 = vld [vmem:[%s6342_s29 + $0x88] sm:$0xff]  ;;  %v6691_v63 = vadd.f32 %v6458_v28, %v1031_v36  ;;  %v1467_v14 = vld [vmem:[%s6342_s29 + $0x98] sm:$0xff]  ;;  %v1468_v36 = vld [vmem:[%s6342_s29 + $0xa0] sm:$0xff] }
  0xbc   : > { %v1154_v32 = vpop.permute.xlu1 %1153  ;;  %v1149_v33 = vpop.permute.xlu0 %1148  ;;  %v6661_v2 = vld [vmem:[#allocation2 + $0x90] sm:$0xff]  ;;  %5646 = vmatprep.mubr.msk.bf16.mxu1 %vm919_vm1, %v1749_v58  ;;  %6211 = vmatprep.subr.msk.bf16.mxu0 %vm1824_vm0, %v5133_v34  ;;  %v1385_v19 = vmul.f32 %v5381_v40, %v6449_v11  ;;  %v1384_v12 = vmul.f32 %v5380_v46, %v6449_v11  ;;  %v1387_v15 = vmul.f32 %v5385_v50, %v6449_v11  ;;  %v1469_v58 = vld [vmem:[%s6342_s29 + $0xa8] sm:$0xff] }
  0xbd   : > { %1308 = vst.msk [vmem:[#allocation2 + $0xa0] sm:$0xff] %vm919_vm1, %v1292_v24  ;;  %v1267_v41 = vmul.f32 %v1154_v32, %v6532_v48  ;;  %v1266_v42 = vmul.f32 %v1149_v33, %v6542_v56  ;;  %1557 = vperm.xlu1 %6225, %v1463_v18   ;;  %1552 = vperm.xlu0 %6224, %v1462_v21   ;;  %v1750_v47 = vrot.slane %v6661_v2, 7  ;;  %v1464_v48 = vld [vmem:[%s6342_s29 + $0x80] sm:$0xff] }
  0xbe   : > { %5782 = vmatprep.mubr.msk.bf16.mxu0 %vm919_vm1, %v6661_v2  ;;  %v6684_v56 = vadd.f32 %v6458_v28, %v1028_v54  ;;  %v1386_v16 = vmul.f32 %v5384_v51, %v6449_v11  ;;  %v6716_v30 = vadd.f32 %v6458_v28, %v1385_v19  ;;  %v6723_v32 = vadd.f32 %v6458_v28, %v1384_v12  ;;  %v1471_v51 = vld [vmem:[%s6342_s29 + $0xb8] sm:$0xff]  ;;  %v1473_v12 = vld [vmem:[%s6342_s29 + $0xc8] sm:$0xff] }
  0xbf   : > { %v1293_v26 = vpack.c.bf16 %v1267_v41, %v1266_v42  ;;  %v1751_v60 = vsel %vm1742_vm2, %v1748_v17, %v1750_v47  ;;  %v6730_v34 = vadd.f32 %v6458_v28, %v1387_v15  ;;  %v6772_v15 = vshll.u32 %v6661_v2, 16 }
  0xc0   : > { %v1164_v52 = vpop.permute.xlu1 %1163  ;;  %v1159_v53 = vpop.permute.xlu0 %1158  ;;  %v6688_v61 = vld [vmem:[#allocation2 + $0x98] sm:$0xff]  ;;  %5647 = vmatmul.mubr.msk.bf16.gmra.mrb[4].mxu1 %vm919_vm1, %v1751_v60 }
  0xc1   : > { %1309 = vst.msk [vmem:[#allocation2 + $0xa8] sm:$0xff] %vm919_vm1, %v1293_v26  ;;  %v1269_v3 = vmul.f32 %v1164_v52, %v6548_v62  ;;  %v1268_v6 = vmul.f32 %v1159_v53, %v6551_v55  ;;  %1567 = vperm.xlu1 %6225, %v1465_v49   ;;  %1562 = vperm.xlu0 %6224, %v1464_v48   ;;  %v1752_v13 = vrot.slane %v6688_v61, 7  ;;  %v1466_v62 = vld [vmem:[%s6342_s29 + $0x90] sm:$0xff]  ;;  %v6749_v26 = vshll.u32 %v6617_v4, 16 }
  0xc2   : > { %5783 = vmatmul.mubr.msk.bf16.gmra.mrb[4].mxu0 %vm919_vm1, %v6688_v61  ;;  %v6710_v55 = vadd.f32 %v6458_v28, %v1030_v27  ;;  %v1470_v27 = vld [vmem:[%s6342_s29 + $0xb0] sm:$0xff] }
  0xc3   : > { %v1294_v17 = vpack.c.bf16 %v1269_v3, %v1268_v6  ;;  %v1753_v21 = vsel %vm1742_vm2, %v1750_v47, %v1752_v13  ;;  %v6740_v47 = vshll.u32 %v6586_v37, 16 }
  0xc4   : > { %v1174_v18 = vpop.permute.xlu1 %1173  ;;  %v1169_v24 = vpop.permute.xlu0 %1168  ;;  %v6713_v54 = vld [vmem:[#allocation2 + $0xa0] sm:$0xff]  ;;  %5650 = vmatprep.mubr.msk.bf16.mxu1 %vm919_vm1, %v1753_v21 }
  0xc5   : > { %1310 = vst.msk [vmem:[#allocation2 + $0xb0] sm:$0xff] %vm919_vm1, %v1294_v17  ;;  %v1271_v11 = vmul.f32 %v1174_v18, %v6554_v57  ;;  %v1270_v31 = vmul.f32 %v1169_v24, %v6558_v0  ;;  %1577 = vperm.xlu1 %6225, %v1467_v14   ;;  %1572 = vperm.xlu0 %6224, %v1466_v62   ;;  %v1754_v33 = vrot.slane %v6713_v54, 7  ;;  %v3309_v3 = vrot.slane %v6740_v47, 1 }
  0xc6   : > { %5786 = vmatprep.mubr.msk.bf16.mxu0 %vm919_vm1, %v6713_v54  ;;  %v6733_v57 = vadd.f32 %v6458_v28, %v1386_v16 }
  0xc7   : > { %v1295_v0 = vpack.c.bf16 %v1271_v11, %v1270_v31  ;;  %v1755_v42 = vsel %vm1742_vm2, %v1752_v13, %v1754_v33  ;;  %v6767_v13 = vshrl.u32 %v6586_v37, 16  ;;  %v1475_v31 = vld [vmem:[%s6342_s29 + $0xd8] sm:$0xff] }
  0xc8   : > { %v1184_v40 = vpop.permute.xlu1 %1183  ;;  %v1179_v41 = vpop.permute.xlu0 %1178  ;;  %v6737_v46 = vld [vmem:[#allocation2 + $0xa8] sm:$0xff]  ;;  %5651 = vmatmul.mubr.msk.bf16.gmra.mrb[8].mxu1 %vm919_vm1, %v1755_v42  ;;  %v3322_v42 = vrot.slane %v6772_v15, 1 }
  0xc9   : > { %1311 = vst.msk [vmem:[#allocation2 + $0xb8] sm:$0xff] %vm919_vm1, %v1295_v0  ;;  %v1273_v49 = vmul.f32 %v1184_v40, %v6561_v1  ;;  %v1272_v28 = vmul.f32 %v1179_v41, %v6580_v22  ;;  %1587 = vperm.xlu1 %6225, %v1469_v58   ;;  %1582 = vperm.xlu0 %6224, %v1468_v36   ;;  %v1756_v50 = vrot.slane %v6737_v46, 7  ;;  %v1474_v0 = vld [vmem:[%s6342_s29 + $0xd0] sm:$0xff] }
  0xca   : > { %5787 = vmatmul.mubr.msk.bf16.gmra.mrb[8].mxu0 %vm919_vm1, %v6737_v46  ;;  %v3310_v21 = vor.u32 %v3309_v3, %v6767_v13 }
  0xcb   : > { %v1296_v48 = vpack.c.bf16 %v1273_v49, %v1272_v28  ;;  %v1757_v22 = vsel %vm1742_vm2, %v1754_v33, %v1756_v50  ;;  %v6785_v33 = vshll.u32 %v6688_v61, 16 }
  0xcc   : > { %v1194_v52 = vpop.permute.xlu1 %1193  ;;  %v1189_v1 = vpop.permute.xlu0 %1188  ;;  %v6755_v53 = vld [vmem:[#allocation2 + $0xb0] sm:$0xff]  ;;  %5654 = vmatprep.mubr.msk.bf16.mxu1 %vm919_vm1, %v1757_v22  ;;  %v1476_v22 = vld [vmem:[%s6342_s29 + $0xe0] sm:$0xff] }
  0xcd   : > { %1312 = vst.msk [vmem:[#allocation2 + $0xc0] sm:$0xff] %vm919_vm1, %v1296_v48  ;;  %v1275_v60 = vmul.f32 %v1194_v52, %v6589_v38  ;;  %v1274_v19 = vmul.f32 %v1189_v1, %v6592_v39  ;;  %1597 = vperm.xlu1 %6225, %v1471_v51   ;;  %1592 = vperm.xlu0 %6224, %v1470_v27   ;;  %v1758_v6 = vrot.slane %v6755_v53, 7  ;;  %v1472_v38 = vld [vmem:[%s6342_s29 + $0xc0] sm:$0xff]  ;;  %v3314_v39 = vrot.slane %v6749_v26, 1  ;;  %v1477_v27 = vld [vmem:[%s6342_s29 + $0xe8] sm:$0xff] }
  0xce   : > { %5790 = vmatprep.mubr.msk.bf16.mxu0 %vm919_vm1, %v6755_v53  ;;  %v6802_v51 = vshrl.u32 %v6617_v4, 16  ;;  %v6805_v48 = vshrl.u32 %v6661_v2, 16  ;;  %v6816_v2 = vshll.u32 %v6713_v54, 16 }
  0xcf   : > { %v1297_v14 = vpack.c.bf16 %v1275_v60, %v1274_v19  ;;  %v1759_v62 = vsel %vm1742_vm2, %v1756_v50, %v1758_v6 }
  0xd0   : > { %v1204_v16 = vpop.permute.xlu1 %1203  ;;  %v1199_v17 = vpop.permute.xlu0 %1198  ;;  %v6775_v18 = vld [vmem:[#allocation2 + $0xb8] sm:$0xff]  ;;  %5655 = vmatmul.mubr.msk.bf16.gmra.mrb[12].mxu1 %vm919_vm1, %v1759_v62  ;;  %v3326_v3 = vor.u32 %v3322_v42, %v6805_v48 }
  0xd1   : > { %1313 = vst.msk [vmem:[#allocation2 + $0xc8] sm:$0xff] %vm919_vm1, %v1297_v14  ;;  %v1277_v37 = vmul.f32 %v1204_v16, %v6599_v45  ;;  %v1276_v24 = vmul.f32 %v1199_v17, %v6613_v59  ;;  %1607 = vperm.xlu1 %6225, %v1473_v12   ;;  %1602 = vperm.xlu0 %6224, %v1472_v38   ;;  %v1760_v11 = vrot.slane %v6775_v18, 7  ;;  %v6826_v16 = vshll.u32 %v6737_v46, 16 }
  0xd2   : > { %5791 = vmatmul.mubr.msk.bf16.gmra.mrb[12].mxu0 %vm919_vm1, %v6775_v18  ;;  %v3315_v45 = vsel %vm3303_vm3, %v3310_v21, %v3314_v39 }
  0xd3   : > { %v1298_v58 = vpack.c.bf16 %v1277_v37, %v1276_v24  ;;  %5812 = vmatprep.mubr.msk.bf16.mxu0 %vm919_vm1, %v3315_v45  ;;  %v1761_v40 = vsel %vm1742_vm2, %v1758_v6, %v1760_v11  ;;  %v6835_v37 = vld [vmem:[%s7755_s8 + $0x1c] sm:$0xf] }
  0xd4   : > { %v1214_v59 = vpop.permute.xlu1 %1213  ;;  %v1209_v36 = vpop.permute.xlu0 %1208  ;;  %v6793_v41 = vld [vmem:[#allocation2 + $0xc0] sm:$0xff]  ;;  %5658 = vmatprep.mubr.msk.bf16.mxu1 %vm919_vm1, %v1761_v40  ;;  %v1704_v40 = vld [vmem:[#allocation2 + $0x70] sm:$0xc0] }
  0xd5   : > { %1314 = vst.msk [vmem:[#allocation2 + $0xd0] sm:$0xff] %vm919_vm1, %v1298_v58  ;;  %v1279_v49 = vmul.f32 %v1214_v59, %v6620_v5  ;;  %v1278_v28 = vmul.f32 %v1209_v36, %v6641_v29  ;;  %1617 = vperm.xlu1 %6225, %v1475_v31   ;;  %v1762_v50 = vrot.slane %v6793_v41, 7  ;;  %1612 = vperm.xlu0 %6224, %v1474_v0   ;;  %v3330_v5 = vrot.slane %v6785_v33, 1 }
  0xd6   : > { %v3318_v29 = vor.u32 %v3314_v39, %v6802_v51  ;;  %v1479_v39 = vld [vmem:[%s6342_s29 + $0xf8] sm:$0xff]  ;;  %v6843_v31 = vsel %vm1824_vm0, %v6627_v10, 0  ;;  %v3338_v0 = vrot.slane %v6816_v2, 1  ;;  %v6852_v59 = vshrl.u32 %v6688_v61, 16 }
  0xd7   : > { %v1299_v52 = vpack.c.bf16 %v1279_v49, %v1278_v28  ;;  %v1763_v1 = vsel %vm1742_vm2, %v1760_v11, %v1762_v50  ;;  %v3331_v62 = vsel %vm3303_vm3, %v3326_v3, %v3330_v5  ;;  %v6857_v10 = vshrl.u32 %v6713_v54, 16 }
  0xd8   : > { %v1224_v60 = vpop.permute.xlu1 %1223  ;;  %v1219_v19 = vpop.permute.xlu0 %1218  ;;  %v6813_v4 = vld [vmem:[#allocation2 + $0xc8] sm:$0xff]  ;;  %5659 = vmatmul.mubr.msk.bf16.gmra.mrb[16].mxu1 %vm919_vm1, %v1763_v1  ;;  %v3323_v38 = vsel %vm3303_vm3, %v3318_v29, %v3322_v42  ;;  %v3346_v36 = vrot.slane %v6826_v16, 1  ;;  %v6862_v42 = vshll.u32 %v6755_v53, 16  ;;  %v3334_v61 = vor.u32 %v3330_v5, %v6852_v59 }
  0xd9   : > { %1315 = vst.msk [vmem:[#allocation2 + $0xd8] sm:$0xff] %vm919_vm1, %v1299_v52  ;;  %v1281_v6 = vmul.f32 %v1224_v60, %v6644_v43  ;;  %v1280_v12 = vmul.f32 %v1219_v19, %v6647_v20  ;;  %1627 = vperm.xlu1 %6225, %v1477_v27   ;;  %v1764_v14 = vrot.slane %v6813_v4, 7  ;;  %1622 = vperm.xlu0 %6224, %v1476_v22   ;;  %v1478_v20 = vld [vmem:[%s6342_s29 + $0xf0] sm:$0xff]  ;;  %v1999_v22 = vshrl.u32 %v6564_v7, 16 }
  0xda   : > { %5813 = vmatmul.mubr.msk.bf16.vlgmr.msra.gmra.mrb[0].mxu0 %vm919_vm1, %v3323_v38  ;;  %v3342_v52 = vor.u32 %v3338_v0, %v6857_v10  ;;  %v3339_v29 = vsel %vm3303_vm3, %v3334_v61, %v3338_v0  ;;  %v1991_v60 = vshrl.u32 %v1704_v40, 16  ;;  %v6876_v5 = vshll.u32 %v6775_v18, 16 }
  0xdb   : > { %v1300_v17 = vpack.c.bf16 %v1281_v6, %v1280_v12  ;;  %v1765_v43 = vsel %vm1742_vm2, %v1762_v50, %v1764_v14  ;;  %5845 = vmatpush3.bf16.msra.mxu0 %v6699_v9  ;;  %5816 = vmatprep.mubr.msk.bf16.mxu0 %vm919_vm1, %v3331_v62  ;;  %v2002_v3 = vshll.u32 %v6564_v7, 16  ;;  %v3354_v38 = vrot.slane %v6862_v42, 1 }
  0xdc   : > { %v1234_v24 = vpop.permute.xlu1 %1233  ;;  %v1229_v21 = vpop.permute.xlu0 %1228  ;;  %v6839_v11 = vld [vmem:[#allocation2 + $0xd0] sm:$0xff]  ;;  %5662 = vmatprep.mubr.msk.bf16.mxu1 %vm919_vm1, %v1765_v43  ;;  %6212 = vmatprep.subr.msk.bf16.mxu0 %vm1824_vm0, %v6835_v37 }
  0xdd   : > { %1316 = vst.msk [vmem:[#allocation2 + $0xe0] sm:$0xff] %vm919_vm1, %v1300_v17  ;;  %v1283_v58 = vmul.f32 %v1234_v24, %v6653_v25  ;;  %v1282_v45 = vmul.f32 %v1229_v21, %v6667_v35  ;;  %1637 = vperm.xlu1 %6225, %v1479_v39   ;;  %v1766_v9 = vrot.slane %v6839_v11, 7  ;;  %1632 = vperm.xlu0 %6224, %v1478_v20   ;;  %v1994_v39 = vshll.u32 %v1704_v40, 16 }
  0xde   : > { %v6892_v20 = vshrl.u32 %v6737_v46, 16  ;;  %v6895_v24 = vshrl.u32 %v6755_v53, 16  ;;  %v1993_v21 = vrot.slane %v1991_v60, 6  ;;  %v2004_v53 = vrot.slane %v2002_v3, 7 }
  0xdf   : > { %v1301_v25 = vpack.c.bf16 %v1283_v58, %v1282_v45  ;;  %v1767_v35 = vsel %vm1742_vm2, %v1764_v14, %v1766_v9  ;;  %v1996_v40 = vrot.slane %v1994_v39, 7  ;;  %v2010_v39 = vrot.slane %v6767_v13, 6 }
  0xe0   : > { %v1244_v49 = vpop.permute.xlu1 %1243  ;;  %v1239_v28 = vpop.permute.xlu0 %1238  ;;  %v6865_v50 = vld [vmem:[#allocation2 + $0xd8] sm:$0xff]  ;;  %5663 = vmatmul.mubr.msk.bf16.gmra.mrb[20].mxu1 %vm919_vm1, %v1767_v35  ;;  %v3358_v35 = vor.u32 %v3354_v38, %v6895_v24 }
  0xe1   : > { %1317 = vst.msk [vmem:[#allocation2 + $0xe8] sm:$0xff] %vm919_vm1, %v1301_v25  ;;  %v1285_v54 = vmul.f32 %v1244_v49, %v6675_v44  ;;  %v1284_v27 = vmul.f32 %v1239_v28, %v6684_v56  ;;  %v1768_v1 = vrot.slane %v6865_v50, 7  ;;  %v3347_v44 = vsel %vm3303_vm3, %v3342_v52, %v3346_v36 }
  0xe2   : > { %5817 = vmatmul.mubr.msk.bf16.gmra.mrb[4].mxu0 %vm919_vm1, %v3339_v29  ;;  %v3350_v25 = vor.u32 %v3346_v36, %v6892_v20  ;;  %v6913_v36 = vshll.u32 %v6793_v41, 16 }
  0xe3   : > { %v1302_v19 = vpack.c.bf16 %v1285_v54, %v1284_v27  ;;  %v1769_v56 = vsel %vm1742_vm2, %v1766_v9, %v1768_v1  ;;  %5820 = vmatprep.mubr.msk.bf16.mxu0 %vm919_vm1, %v3347_v44  ;;  %v3362_v9 = vrot.slane %v6876_v5, 1 }
  0xe4   : > { %v1254_v6 = vpop.permute.xlu1 %1253  ;;  %v1249_v12 = vpop.permute.xlu0 %1248  ;;  %5666 = vmatprep.mubr.msk.bf16.mxu1 %vm919_vm1, %v1769_v56  ;;  %v6884_v14 = vld [vmem:[#allocation2 + $0xe0] sm:$0xff]  ;;  %v3355_v54 = vsel %vm3303_vm3, %v3350_v25, %v3354_v38  ;;  %v3370_v38 = vrot.slane %v6913_v36, 1  ;;  %v2022_v25 = vrot.slane %v6749_v26, 7 }
  0xe5   : > { %1318 = vst.msk [vmem:[#allocation2 + $0xf0] sm:$0xff] %vm919_vm1, %v1302_v19  ;;  %v1287_v17 = vmul.f32 %v1254_v6, %v6691_v63  ;;  %v1286_v62 = vmul.f32 %v1249_v12, %v6710_v55  ;;  %v1770_v43 = vrot.slane %v6884_v14, 7  ;;  %v2001_v63 = vrot.slane %v1999_v22, 6 }
  0xe6   : > { %v3363_v52 = vsel %vm3303_vm3, %v3358_v35, %v3362_v9  ;;  %v1997_v19 = vor.u32 %v1996_v40, %v1993_v21  ;;  %v6956_v40 = vshll.u32 %v6865_v50, 16 }
  0xe7   : > { %v1303_v58 = vpack.c.bf16 %v1287_v17, %v1286_v62  ;;  %v1771_v45 = vsel %vm1742_vm2, %v1768_v1, %v1770_v43  ;;  %v2005_v44 = vor.u32 %v2004_v53, %v2001_v63  ;;  %v2013_v17 = vrot.slane %v6740_v47, 7 }
  0xe8   : > { %v1488_v0 = vpop.permute.xlu1 %1487  ;;  %v1483_v55 = vpop.permute.xlu0 %1482  ;;  %v6903_v46 = vld [vmem:[#allocation2 + $0xe8] sm:$0xff]  ;;  %5667 = vmatmul.mubr.msk.bf16.gmra.mrb[24].mxu1 %vm919_vm1, %v1771_v45  ;;  %v6934_v62 = vshrl.u32 %v6775_v18, 16 }
  0xe9   : > { %1319 = vst.msk [vmem:[#allocation2 + $0xf8] sm:$0xff] %vm919_vm1, %v1303_v58  ;;  %v1641_v49 = vmul.f32 %v1488_v0, %v6716_v30  ;;  %v1640_v28 = vmul.f32 %v1483_v55, %v6723_v32  ;;  %v1772_v61 = vrot.slane %v6903_v46, 7  ;;  %v6920_v30 = vshll.u32 %v6813_v4, 16 }
  0xea   : > { %5821 = vmatmul.mubr.msk.bf16.gmra.mrb[8].mxu0 %vm919_vm1, %v3355_v54  ;;  %v6938_v58 = vshrl.u32 %v6793_v41, 16  ;;  %v2006_v63 = vsel %vm1989_vm4, %v1997_v19, %v2005_v44  ;;  %v3366_v0 = vor.u32 %v3362_v9, %v6934_v62  ;;  %v2019_v55 = vrot.slane %v6802_v51, 6 }
  0xeb   : > { %v1672_v27 = vpack.c.bf16 %v1641_v49, %v1640_v28  ;;  %v1773_v1 = vsel %vm1742_vm2, %v1770_v43, %v1772_v61  ;;  %5824 = vmatprep.mubr.msk.bf16.mxu0 %vm919_vm1, %v3363_v52  ;;  %v6949_v41 = vshll.u32 %v6839_v11, 16  ;;  %v2014_v28 = vor.u32 %v2013_v17, %v2010_v39 }
  0xec   : > { %v1498_v32 = vpop.permute.xlu1 %1497  ;;  %v1493_v29 = vpop.permute.xlu0 %1492  ;;  %5670 = vmatprep.mubr.msk.bf16.mxu1 %vm919_vm1, %v1773_v1  ;;  %v6924_v60 = vld [vmem:[#allocation2 + $0xf0] sm:$0x7f]  ;;  %v3374_v18 = vor.u32 %v6938_v58, %v3370_v38  ;;  %v3371_v35 = vsel %vm3303_vm3, %v3366_v0, %v3370_v38  ;;  %v2028_v54 = vrot.slane %v6805_v48, 6  ;;  %v2359_v1 = vshrl.u32 %v6566_v8, 16 }
  0xed   : > { %1688 = vst.msk [vmem:[#allocation2 + $0x100] sm:$0xff] %vm919_vm1, %v1672_v27  ;;  %v1643_v56 = vmul.f32 %v1498_v32, %v6730_v34  ;;  %v1642_v6 = vmul.f32 %v1493_v29, %v6733_v57  ;;  %v1774_v12 = vrot.slane %v6924_v60, 7  ;;  %v3378_v34 = vrot.slane %v6920_v30, 1 }
  0xee   : > { %v2031_v27 = vrot.slane %v6772_v15, 7  ;;  %v3386_v52 = vrot.slane %v6949_v41, 1  ;;  %v6964_v32 = vshrl.u32 %v6813_v4, 16  ;;  %v2037_v29 = vrot.slane %v6852_v59, 6  ;;  %v6978_v4 = vld [vmem:[%s7755_s8 + $0xc] sm:$0xf] }
  0xef   : > { %v1673_v43 = vpack.c.bf16 %v1643_v56, %v1642_v6  ;;  %v1775_v21 = vsel %vm1742_vm2, %v1772_v61, %v1774_v12  ;;  %v3379_v9 = vsel %vm3303_vm3, %v3374_v18, %v3378_v34  ;;  %v2023_v61 = vor.u32 %v2022_v25, %v2019_v55 }
  0xf0   : > { %v719_v57 = vpop.permute.xlu1 %718  ;;  %v714_v45 = vpop.permute.xlu0 %713  ;;  %5671 = vmatmul.mubr.msk.bf16.gmra.mrb[28].mxu1 %vm919_vm1, %v1775_v21  ;;  %v6968_v19 = vshrl.u32 %v6839_v11, 16  ;;  %v3394_v56 = vrot.slane %v6956_v40, 1  ;;  %v2040_v6 = vrot.slane %v6785_v33, 7  ;;  %v2015_v39 = vsel %vm1989_vm4, %v2005_v44, %v2014_v28 }
  0xf1   : > { %1689 = vst.msk [vmem:[#allocation2 + $0x108] sm:$0xff] %vm919_vm1, %v1673_v43  ;;  %5676 = vmatprep.mubr.msk.bf16.mxu1 %vm919_vm1, %v2006_v63  ;;  %v2024_v17 = vsel %vm1989_vm4, %v2014_v28, %v2023_v61  ;;  %v3382_v8 = vor.u32 %v6964_v32, %v3378_v34  ;;  %v2032_v43 = vor.u32 %v2031_v27, %v2028_v54  ;;  %v6983_v21 = vshll.u32 %v6884_v14, 16 }
  0xf2   : > { %5825 = vmatmul.mubr.msk.bf16.gmra.mrb[12].mxu0 %vm919_vm1, %v3371_v35  ;;  %v3390_v11 = vor.u32 %v6968_v19, %v3386_v52  ;;  %v6990_v34 = vsel %vm1824_vm0, %v6835_v37, 0  ;;  %v2041_v45 = vor.u32 %v2040_v6, %v2037_v29  ;;  %v6995_v63 = vshll.u32 %v6903_v46, 16  ;;  %v7024_v6 = vld [vmem:[#allocation2 + $0xf8] sm:$0xff] }
  0xf3   : > { %5828 = vmatprep.mubr.msk.bf16.mxu0 %vm919_vm1, %v3379_v9  ;;  %7796 = vst [vmem:[#allocation4_spill] sm:$0xff] %v6983_v21  ;;  %v3387_v44 = vsel %vm3303_vm3, %v3382_v8, %v3386_v52  ;;  %v2361_v0 = vrot.slane %v2359_v1, 7  ;;  %v7002_v37 = vrot.slane %v1999_v22, 7  ;;  %v2033_v25 = vsel %vm1989_vm4, %v2023_v61, %v2032_v43  ;;  %7799 = vst [vmem:[#allocation7_spill] sm:$0xff] %v7024_v6 }
  0xf4   : > { %v729_v53 = vpop.permute.xlu1 %728  ;;  %v724_v49 = vpop.permute.xlu0 %723  ;;  %v3395_v57 = vsel %vm3303_vm3, %v3390_v11, %v3394_v56  ;;  %7797 = vst [vmem:[#allocation5_spill] sm:$0xff] %v6995_v63  ;;  %v3402_v18 = vrot.slane %v6983_v21, 1  ;;  %v7007_v35 = vshrl.u32 %v6865_v50, 16  ;;  %v2046_v9 = vrot.slane %v6857_v10, 6 }
  0xf5   : > { %v2049_v53 = vrot.slane %v6816_v2, 7  ;;  %v7011_v49 = vld [vmem:[#allocation2 + $0xf0] sm:$0xff]  ;;  %v2363_v28 = vor.u32 %v7002_v37, %v2002_v3  ;;  %v2042_v22 = vsel %vm1989_vm4, %v2032_v43, %v2041_v45  ;;  %v7018_v54 = vshrl.u32 %v6884_v14, 16 }
  0xf6   : > { %7798 = vst [vmem:[#allocation6_spill] sm:$0xff] %v7011_v49  ;;  %v3410_v61 = vrot.slane %v6995_v63, 1  ;;  %v3398_v52 = vor.u32 %v7007_v35, %v3394_v56  ;;  %v2055_v1 = vrot.slane %v6892_v20, 6  ;;  %v2058_v29 = vrot.slane %v6826_v16, 7 }
  0xf7   : > { %v7027_v7 = vsel %vm2357_vm5, %v2361_v0, %v2363_v28  ;;  %v3406_v3 = vor.u32 %v7018_v54, %v3402_v18  ;;  %v7759_v14 = vshll.u32 %v7011_v49, 16  ;;  %v2050_v8 = vor.u32 %v2049_v53, %v2046_v9  ;;  %v3300_v53 = vld [vmem:[#allocation2 + $0x100] sm:$0x1] }
  0xf8   : > { %v739_v12 = vpop.permute.xlu1 %738  ;;  %v734_v38 = vpop.permute.xlu0 %733  ;;  %5677 = vmatmul.mubr.msk.bf16.vlgmr.msra.gmra.mrb[0].mxu1 %vm919_vm1, %v2015_v39  ;;  %v2059_v43 = vor.u32 %v2058_v29, %v2055_v1  ;;  %v2067_v0 = vrot.slane %v6862_v42, 7  ;;  %v2076_v9 = vrot.slane %v6876_v5, 7 }
  0xf9   : > { %5680 = vmatprep.mubr.msk.bf16.mxu1 %vm919_vm1, %v2024_v17  ;;  %5709 = vmatpush3.bf16.msra.mxu1 %v6843_v31  ;;  %v3403_v12 = vsel %vm3303_vm3, %v3398_v52, %v3402_v18  ;;  %v3411_v56 = vsel %vm3303_vm3, %v3406_v3, %v3410_v61  ;;  %v7757_v38 = vshll.u32 %v7024_v6, 16  ;;  %v7040_v11 = vrot.slane %v7759_v14, 1  ;;  %v7055_v52 = vld [vmem:[#allocation2 + $0x90] sm:$0xff]  ;;  %v7102_v14 = vld [vmem:[#allocation2 + $0xa8] sm:$0xff] }
  0xfa   : > { %5829 = vmatmul.mubr.msk.bf16.gmra.mrb[16].mxu0 %vm919_vm1, %v3387_v44  ;;  %6207 = vmatprep.subr.msk.bf16.mxu1 %vm1824_vm0, %v6978_v4  ;;  %v7043_v44 = vshrl.u32 %v6903_v46, 16  ;;  %v2051_v46 = vsel %vm1989_vm4, %v2041_v45, %v2050_v8  ;;  %v3432_v45 = vshll.u32 %v3300_v53, 16 }
  0xfb   : > { %5832 = vmatprep.mubr.msk.bf16.mxu0 %vm919_vm1, %v3395_v57  ;;  %v2064_v57 = vrot.slane %v6895_v24, 6  ;;  %v3426_v18 = vrot.slane %v7757_v38, 1 }
  0xfc   : > { %v749_v31 = vpop.permute.xlu1 %748  ;;  %v744_v55 = vpop.permute.xlu0 %743 }
  0xfd   : > { %v2073_v31 = vrot.slane %v6934_v62, 6  ;;  %v3680_v55 = vld [vmem:[#allocation2 + $0x88] sm:$0xff] }
  0xfe   : > { %v3702_v29 = vshll.u32 %v3680_v55, 16  ;;  %v3700_v53 = vshrl.u32 %v3680_v55, 16 }
 0x100   : > { %v759_v27 = vpop.permute.xlu1 %758  ;;  %v754_v50 = vpop.permute.xlu0 %753  ;;  %5681 = vmatmul.mubr.msk.bf16.gmra.mrb[4].mxu1 %vm919_vm1, %v2033_v25  ;;  %v7760_v25 = vshrl.u32 %v7011_v49, 16 }
 0x101   : > { %5684 = vmatprep.mubr.msk.bf16.mxu1 %vm919_vm1, %v2042_v22  ;;  %v2060_v27 = vsel %vm1989_vm4, %v2050_v8, %v2059_v43  ;;  %v3414_v50 = vor.u32 %v7043_v44, %v3410_v61 }
 0x102   : > { %5833 = vmatmul.mubr.msk.bf16.gmra.mrb[20].mxu0 %vm919_vm1, %v3403_v12  ;;  %v3422_v1 = vor.u32 %v7760_v25, %v7040_v11  ;;  %v2068_v12 = vor.u32 %v2067_v0, %v2064_v57  ;;  %v7758_v57 = vshrl.u32 %v7024_v6, 16  ;;  %v3434_v0 = vrot.slane %v3432_v45, 1  ;;  %v7155_v6 = vld [vmem:[#allocation2 + $0xc8] sm:$0xff] }
 0x103   : > { %5836 = vmatprep.mubr.msk.bf16.mxu0 %vm919_vm1, %v3411_v56  ;;  %v3419_v3 = vsel %vm3303_vm3, %v3414_v50, %v7040_v11  ;;  %v2077_v56 = vor.u32 %v2076_v9, %v2073_v31  ;;  %v2082_v9 = vrot.slane %v6938_v58, 6  ;;  %v7079_v50 = vld [vmem:[#allocation2 + $0xa0] sm:$0xff]  ;;  %v2091_v45 = vrot.slane %v6964_v32, 6 }
 0x104   : > { %v769_v39 = vpop.permute.xlu1 %768  ;;  %v764_v17 = vpop.permute.xlu0 %763  ;;  %v7066_v61 = vsel %vm3303_vm3, %v3422_v1, %v3426_v18 }
 0x105   : > { %v7762_v39 = vshll.u32 %v7055_v52, 16 }
 0x107   : > { %v3709_v31 = vrot.slane %v7762_v39, 1  ;;  %v7115_v39 = vld [vmem:[#allocation2 + $0xb0] sm:$0xff] }
 0x108   : > { %v779_v28 = vpop.permute.xlu1 %778  ;;  %v774_v22 = vpop.permute.xlu0 %773  ;;  %5685 = vmatmul.mubr.msk.bf16.gmra.mrb[8].mxu1 %vm919_vm1, %v2051_v46  ;;  %v2069_v46 = vsel %vm1989_vm4, %v2059_v43, %v2068_v12  ;;  %v2085_v43 = vrot.slane %v6913_v36, 7  ;;  %7800 = vst [vmem:[#allocation8_spill] sm:$0xff] %v7115_v39 }
 0x109   : > { %5688 = vmatprep.mubr.msk.bf16.mxu1 %vm919_vm1, %v2060_v27  ;;  %v3704_v28 = vrot.slane %v3702_v29, 1  ;;  %v7071_v22 = vld [vmem:[#allocation2 + $0x98] sm:$0xff]  ;;  %v2078_v27 = vsel %vm1989_vm4, %v2068_v12, %v2077_v56  ;;  %v7083_v29 = vor.u32 %v7758_v57, %v3426_v18 }
 0x10a   : > { %5837 = vmatmul.mubr.msk.bf16.gmra.mrb[24].mxu0 %vm919_vm1, %v3419_v3  ;;  %v7761_v55 = vshll.u32 %v7071_v22, 16  ;;  %v2086_v57 = vor.u32 %v2085_v43, %v2082_v9  ;;  %v2109_v9 = vrot.slane %v7007_v35, 6  ;;  %v2112_v43 = vrot.slane %v6956_v40, 7 }
 0x10b   : > { %5840 = vmatprep.mubr.msk.bf16.mxu0 %vm919_vm1, %v7066_v61  ;;  %v3705_v12 = vor.u32 %v3704_v28, %v3700_v53  ;;  %v2103_v53 = vrot.slane %v6949_v41, 7 }
 0x10c   : > { %v789_v17 = vpop.permute.xlu1 %788  ;;  %v784_v8 = vpop.permute.xlu0 %783  ;;  %v3717_v28 = vrot.slane %v7761_v55, 1  ;;  %v2087_v25 = vsel %vm1989_vm4, %v2077_v56, %v2086_v57  ;;  %v7766_v55 = vshll.u32 %v7102_v14, 16 }
 0x10d   : > { %v2094_v17 = vrot.slane %v6920_v30, 7  ;;  %v3435_v8 = vsel %vm3303_vm3, %v7083_v29, %v3434_v0  ;;  %v3710_v18 = vsel %vm3303_vm3, %v3705_v12, %v3709_v31  ;;  %v7765_v0 = vshrl.u32 %v7055_v52, 16 }
 0x110   : > { %v799_v1 = vpop.permute.xlu1 %798  ;;  %v794_v3 = vpop.permute.xlu0 %793  ;;  %5689 = vmatmul.mubr.msk.bf16.gmra.mrb[12].mxu1 %vm919_vm1, %v2069_v46  ;;  %v2100_v46 = vrot.slane %v6968_v19, 6 }
 0x111   : > { %5692 = vmatprep.mubr.msk.bf16.mxu1 %vm919_vm1, %v2078_v27  ;;  %v7763_v1 = vshll.u32 %v7079_v50, 16  ;;  %v2095_v27 = vor.u32 %v2094_v17, %v2091_v45 }
 0x112   : > { %5841 = vmatmul.mubr.msk.bf16.gmra.mrb[28].mxu0 %vm919_vm1, %v3435_v8  ;;  %v7764_v8 = vshrl.u32 %v7071_v22, 16  ;;  %v2104_v17 = vor.u32 %v2103_v53, %v2100_v46  ;;  %v7127_v46 = vld [vmem:[%s7755_s8 + $0x20] sm:$0xf] }
 0x113   : > { %5846 = vmatprep.mubr.msk.bf16.mxu0 %vm919_vm1, %v3710_v18  ;;  %v3725_v12 = vrot.slane %v7763_v1, 1 }
 0x114   : > { %v809_v3 = vpop.permute.xlu1 %808  ;;  %v804_v38 = vpop.permute.xlu0 %803  ;;  %v3721_v45 = vor.u32 %v7764_v8, %v3717_v28  ;;  %v2121_v8 = vrot.slane %v6983_v21, 7 }
 0x115   : > { %v3713_v38 = vor.u32 %v7765_v0, %v3709_v31  ;;  %v2096_v31 = vsel %vm1989_vm4, %v2086_v57, %v2095_v27  ;;  %v7775_v57 = vshll.u32 %v7115_v39, 16  ;;  %v7138_v0 = vld [vmem:[#allocation2 + $0xb8] sm:$0xff] }
 0x116   : > { %v3726_v56 = vsel %vm3303_vm3, %v3721_v45, %v3725_v12  ;;  %v3733_v45 = vrot.slane %v7766_v55, 1 }
 0x117   : > { %v3741_v55 = vrot.slane %v7775_v57, 1 }
 0x118   : > { %v819_v18 = vpop.permute.xlu1 %818  ;;  %v814_v3 = vpop.permute.xlu0 %813  ;;  %5693 = vmatmul.mubr.msk.bf16.gmra.mrb[16].mxu1 %vm919_vm1, %v2087_v25  ;;  %v2113_v25 = vor.u32 %v2112_v43, %v2109_v9  ;;  %v2127_v9 = vrot.slane %v7043_v44, 6  ;;  %v2130_v43 = vrot.slane %v6995_v63, 7 }
 0x119   : > { %5696 = vmatprep.mubr.msk.bf16.mxu1 %vm919_vm1, %v2096_v31  ;;  %v3718_v18 = vsel %vm3303_vm3, %v3713_v38, %v3717_v28  ;;  %v7773_v3 = vshrl.u32 %v7079_v50, 16  ;;  %v2105_v38 = vsel %vm1989_vm4, %v2095_v27, %v2104_v17  ;;  %v2118_v31 = vrot.slane %v7018_v54, 6 }
 0x11a   : > { %5847 = vmatmul.mubr.msk.bf16.vlgmr.msra.gmra.mrb[0].mxu0 %vm919_vm1, %v3718_v18  ;;  %v7777_v18 = vshrl.u32 %v7102_v14, 16 }
 0x11b   : > { %5879 = vmatpush3.bf16.msra.mxu0 %v6990_v34  ;;  %5850 = vmatprep.mubr.msk.bf16.mxu0 %vm919_vm1, %v3726_v56  ;;  %v7142_v34 = vld [vmem:[#allocation2 + $0xc0] sm:$0xff]  ;;  %v3729_v27 = vor.u32 %v7773_v3, %v3725_v12  ;;  %v2134_v56 = vshrl.u32 %v6924_v60, 16  ;;  %v2122_v3 = vor.u32 %v2121_v8, %v2118_v31  ;;  %v7802_v8 = vshll.u32 %v7138_v0, 16 }
 0x11c   : > { %v829_v53 = vpop.permute.xlu1 %828  ;;  %v824_v28 = vpop.permute.xlu0 %823  ;;  %6213 = vmatprep.subr.msk.bf16.mxu0 %vm1824_vm0, %v7127_v46  ;;  %v3737_v12 = vor.u32 %v7777_v18, %v3733_v45  ;;  %v7161_v21 = vshll.u32 %v7142_v34, 16  ;;  %v7778_v31 = vshrl.u32 %v7138_v0, 16  ;;  %v7199_v18 = vshrl.u32 %v7155_v6, 16 }
 0x11d   : > { %v2137_v53 = vshll.u32 %v6924_v60, 16  ;;  %v2114_v28 = vsel %vm1989_vm4, %v2104_v17, %v2113_v25  ;;  %v3734_v63 = vsel %vm3303_vm3, %v3729_v27, %v3733_v45  ;;  %v2131_v60 = vor.u32 %v2130_v43, %v2127_v9 }
 0x11e   : > { %v7776_v17 = vshrl.u32 %v7115_v39, 16  ;;  %v2136_v57 = vrot.slane %v2134_v56, 6  ;;  %v3749_v45 = vrot.slane %v7802_v8, 1  ;;  %v2123_v27 = vsel %vm1989_vm4, %v2113_v25, %v2122_v3 }
 0x11f   : > { %v2139_v1 = vrot.slane %v2137_v53, 7  ;;  %v2132_v53 = vsel %vm1989_vm4, %v2122_v3, %v2131_v60 }
 0x120   : > { %v839_v49 = vpop.permute.xlu1 %838  ;;  %v834_v23 = vpop.permute.xlu0 %833  ;;  %5697 = vmatmul.mubr.msk.bf16.gmra.mrb[20].mxu1 %vm919_vm1, %v2105_v38  ;;  %v7174_v38 = vld [vmem:[#allocation2 + $0xd0] sm:$0xff]  ;;  %v3745_v56 = vor.u32 %v7776_v17, %v3741_v55  ;;  %v3753_v25 = vor.u32 %v7778_v31, %v3749_v45 }
 0x121   : > { %5700 = vmatprep.mubr.msk.bf16.mxu1 %vm919_vm1, %v2114_v28  ;;  %v7167_v23 = vshll.u32 %v7155_v6, 16  ;;  %v3742_v49 = vsel %vm3303_vm3, %v3737_v12, %v3741_v55  ;;  %v2140_v28 = vor.u32 %v2139_v1, %v2136_v57  ;;  %v7183_v12 = vshrl.u32 %v7142_v34, 16 }
 0x122   : > { %5851 = vmatmul.mubr.msk.bf16.gmra.mrb[4].mxu0 %vm919_vm1, %v3734_v63  ;;  %v3757_v63 = vrot.slane %v7161_v21, 1  ;;  %v3750_v55 = vsel %vm3303_vm3, %v3745_v56, %v3749_v45  ;;  %v4105_v45 = vrot.slane %v7115_v39, 1  ;;  %v7254_v39 = vld [vmem:[#allocation2 + $0xe8] sm:$0xff] }
 0x123   : > { %7801 = vst [vmem:[#allocation9_spill] sm:$0xff] %v7167_v23  ;;  %5854 = vmatprep.mubr.msk.bf16.mxu0 %vm919_vm1, %v3742_v49  ;;  %v3765_v8 = vrot.slane %v7167_v23, 1  ;;  %v7187_v49 = vshll.u32 %v7174_v38, 16  ;;  %v2141_v3 = vsel %vm1989_vm4, %v2131_v60, %v2140_v28  ;;  %v7208_v60 = vld [vmem:[#allocation2 + $0xe0] sm:$0xff] }
 0x124   : > { %v849_v9 = vpop.permute.xlu1 %848  ;;  %v844_v43 = vpop.permute.xlu0 %843  ;;  %v3761_v17 = vor.u32 %v7183_v12, %v3757_v63  ;;  %v3758_v1 = vsel %vm3303_vm3, %v3753_v25, %v3757_v63 }
 0x125   : > { %7803 = vst [vmem:[#allocation10_spill] sm:$0xff] %v7187_v49  ;;  %v3769_v63 = vor.u32 %v7199_v18, %v3765_v8 }
 0x126   : > { %v3766_v57 = vsel %vm3303_vm3, %v3761_v17, %v3765_v8  ;;  %v7779_v17 = vrot.slane %v7102_v14, 1 }
 0x128   : > { %v1508_v9 = vpop.permute.xlu1 %1507  ;;  %v1503_v43 = vpop.permute.xlu0 %1502  ;;  %5701 = vmatmul.mubr.msk.bf16.gmra.mrb[24].mxu1 %vm919_vm1, %v2123_v27  ;;  %v7224_v8 = vsel %vm4095_vm6, %v7779_v17, %v4105_v45 }
 0x129   : > { %5704 = vmatprep.mubr.msk.bf16.mxu1 %vm919_vm1, %v2132_v53  ;;  %v3773_v9 = vrot.slane %v7187_v49, 1  ;;  %v7202_v43 = vld [vmem:[#allocation2 + $0xd8] sm:$0xff]  ;;  %v7804_v53 = vrot.slane %v6767_v13, 7  ;;  %v7807_v49 = vrot.slane %v6767_v13, 7 }
 0x12a   : > { %5855 = vmatmul.mubr.msk.bf16.gmra.mrb[8].mxu0 %vm919_vm1, %v3750_v55  ;;  %v7217_v25 = vshll.u32 %v7202_v43, 16  ;;  %v7247_v17 = vshrl.u32 %v7202_v43, 16 }
 0x12b   : > { %5858 = vmatprep.mubr.msk.bf16.mxu0 %vm919_vm1, %v3758_v1  ;;  %v7214_v28 = vor.u32 %v6740_v47, %v7804_v53  ;;  %v3774_v55 = vsel %vm3303_vm3, %v3769_v63, %v3773_v9  ;;  %v2368_v1 = vrot.slane %v6802_v51, 7  ;;  %v7237_v51 = vshrl.u32 %v7174_v38, 16 }
 0x12c   : > { %v1518_v27 = vpop.permute.xlu1 %1517  ;;  %v1513_v56 = vpop.permute.xlu0 %1512  ;;  %7805 = vst [vmem:[#allocation11_spill] sm:$0xff] %v7217_v25  ;;  %v3781_v63 = vrot.slane %v7217_v25, 1  ;;  %7806 = vst [vmem:[#allocation12_spill] sm:$0xff] %v7247_v17 }
 0x12d   : > { %v7780_v27 = vrot.slane %v7138_v0, 1  ;;  %v7228_v56 = vshll.u32 %v7208_v60, 16 }
 0x12f   : > { %v7233_v53 = vsel %vm4095_vm6, %v4105_v45, %v7780_v27  ;;  %v3789_v45 = vrot.slane %v7228_v56, 1 }
 0x130   : > { %v1528_v31 = vpop.permute.xlu1 %1527  ;;  %v1523_v47 = vpop.permute.xlu0 %1522  ;;  %5705 = vmatmul.mubr.msk.bf16.gmra.mrb[28].mxu1 %vm919_vm1, %v2141_v3  ;;  %v3777_v3 = vor.u32 %v7237_v51, %v3773_v9  ;;  %v2859_v9 = vsel %vm1824_vm0, %v6978_v4, 0  ;;  %v7276_v4 = vshrl.u32 %v7208_v60, 16 }
 0x131   : > { %5710 = vmatprep.mubr.msk.bf16.mxu1 %vm919_vm1, %v7027_v7  ;;  %v2367_v31 = vsel %vm2357_vm5, %v7002_v37, %v7214_v28  ;;  %v2369_v47 = vor.u32 %v6749_v26, %v2368_v1  ;;  %v2371_v7 = vrot.slane %v6805_v48, 7  ;;  %v3785_v37 = vor.u32 %v7247_v17, %v3781_v63  ;;  %v3696_v17 = vld [vmem:[#allocation2 + $0x108] sm:$0x1] }
 0x132   : > { %5859 = vmatmul.mubr.msk.bf16.gmra.mrb[12].mxu0 %vm919_vm1, %v3766_v57  ;;  %v2374_v26 = vrot.slane %v6852_v59, 7  ;;  %v7268_v48 = vshll.u32 %v7254_v39, 16 }
 0x133   : > { %5862 = vmatprep.mubr.msk.bf16.mxu0 %vm919_vm1, %v3774_v55  ;;  %v7261_v57 = vsel %vm2357_vm5, %v7807_v49, %v2369_v47  ;;  %v3782_v55 = vsel %vm3303_vm3, %v3777_v3, %v3781_v63  ;;  %v2372_v59 = vor.u32 %v6772_v15, %v2371_v7  ;;  %v4127_v47 = vrot.slane %v3696_v17, 1  ;;  %v6228_v15 = vld [vmem:[%s7755_s8 + $0x10] sm:$0xf] }
 0x134   : > { %v1538_v27 = vpop.permute.xlu1 %1537  ;;  %v1533_v25 = vpop.permute.xlu0 %1532  ;;  %v2375_v49 = vor.u32 %v6785_v33, %v2374_v26  ;;  %v3793_v3 = vor.u32 %v7276_v4, %v3789_v45 }
 0x135   : > { %v3790_v25 = vsel %vm3303_vm3, %v3785_v37, %v3789_v45  ;;  %v7270_v27 = vld [vmem:[#allocation2 + $0x100] sm:$0xff] }
 0x136   : > { %v7793_v63 = vrot.slane %v7270_v27, 1  ;;  %v3819_v45 = vshll.u32 %v7270_v27, 16 }
 0x138   : > { %v1548_v23 = vpop.permute.xlu1 %1547  ;;  %v1543_v13 = vpop.permute.xlu0 %1542  ;;  %5711 = vmatmul.mubr.msk.bf16.vlgmr.msra.gmra.mrb[0].mxu1 %vm919_vm1, %v2367_v31  ;;  %v7289_v31 = vsel %vm2357_vm5, %v2368_v1, %v2372_v59  ;;  %v7295_v37 = vsel %vm4095_vm6, %v7793_v63, %v4127_v47  ;;  %v4426_v63 = vrot.slane %v7228_v56, 2 }
 0x139   : > { %5714 = vmatprep.mubr.msk.bf16.mxu1 %vm919_vm1, %v7261_v57  ;;  %5743 = vmatpush3.bf16.msra.mxu1 %v2859_v9  ;;  %v3797_v23 = vrot.slane %v7268_v48, 1  ;;  %v2380_v13 = vrot.slane %v6892_v20, 7 }
 0x13a   : > { %5863 = vmatmul.mubr.msk.bf16.gmra.mrb[16].mxu0 %vm919_vm1, %v3782_v55  ;;  %6209 = vmatprep.subr.msk.bf16.mxu1 %vm1824_vm0, %v6228_v15  ;;  %v2377_v55 = vrot.slane %v6857_v10, 7  ;;  %v7300_v15 = vsel %vm2357_vm5, %v2371_v7, %v2375_v49  ;;  %v3821_v49 = vrot.slane %v3819_v45, 1 }
 0x13b   : > { %5866 = vmatprep.mubr.msk.bf16.mxu0 %vm919_vm1, %v3790_v25  ;;  %v7303_v25 = vshrl.u32 %v7254_v39, 16  ;;  %v3798_v1 = vsel %vm3303_vm3, %v3793_v3, %v3797_v23  ;;  %v2381_v20 = vor.u32 %v6826_v16, %v2380_v13  ;;  %v2383_v3 = vrot.slane %v6895_v24, 7 }
 0x13c   : > { %v1558_v33 = vpop.permute.xlu1 %1557  ;;  %v1553_v9 = vpop.permute.xlu0 %1552  ;;  %v2378_v10 = vor.u32 %v6816_v2, %v2377_v55 }
 0x13d   : > { %v3801_v33 = vor.u32 %v7303_v25, %v3797_v23  ;;  %v7323_v2 = vsel %vm2357_vm5, %v2377_v55, %v2381_v20  ;;  %v7791_v16 = vrot.slane %v7303_v25, 7  ;;  %v7336_v55 = vld [vmem:[#allocation2 + $0x88] sm:$0xfe] }
 0x13f   : > { %v3806_v7 = vsel %vm3303_vm3, %v3801_v33, %v7040_v11  ;;  %v3827_v11 = vshll.u32 %v3696_v17, 16  ;;  %v7792_v33 = vrot.slane %v7276_v4, 7  ;;  %v2792_v24 = vor.u32 %v7268_v48, %v7791_v16 }
 0x140   : > { %v1568_v59 = vpop.permute.xlu1 %1567  ;;  %v1563_v47 = vpop.permute.xlu0 %1562  ;;  %5715 = vmatmul.mubr.msk.bf16.gmra.mrb[4].mxu1 %vm919_vm1, %v7289_v31  ;;  %v3823_v17 = vshrl.u32 %v7270_v27, 16  ;;  %v4425_v16 = vrot.slane %v7276_v4, 1 }
 0x141   : > { %5718 = vmatprep.mubr.msk.bf16.mxu1 %vm919_vm1, %v7300_v15  ;;  %v7320_v59 = vsel %vm2357_vm5, %v2374_v26, %v2378_v10  ;;  %v7327_v47 = vrot.slane %v6934_v62, 7  ;;  %v2384_v10 = vor.u32 %v6862_v42, %v2383_v3  ;;  %v7343_v62 = vsel %vm2357_vm5, %v7792_v33, %v2792_v24 }
 0x142   : > { %5867 = vmatmul.mubr.msk.bf16.gmra.mrb[20].mxu0 %vm919_vm1, %v3798_v1  ;;  %v3822_v1 = vsel %vm3303_vm3, %v7083_v29, %v3821_v49  ;;  %v3829_v42 = vrot.slane %v3827_v11, 1  ;;  %v3825_v24 = vor.u32 %v3823_v17, %v3821_v49  ;;  %v2392_v33 = vrot.slane %v6964_v32, 7 }
 0x143   : > { %5870 = vmatprep.mubr.msk.bf16.mxu0 %vm919_vm1, %v3806_v7  ;;  %v2387_v29 = vor.u32 %v6876_v5, %v7327_v47  ;;  %v4096_v7 = vrot.slane %v7336_v55, 1  ;;  %v4441_v32 = vrot.slane %v3823_v17, 1  ;;  %v4101_v17 = vrot.slane %v7079_v50, 1 }
 0x144   : > { %v1578_v23 = vpop.permute.xlu1 %1577  ;;  %v1573_v9 = vpop.permute.xlu0 %1572  ;;  %v3830_v11 = vsel %vm3303_vm3, %v3825_v24, %v3829_v42 }
 0x145   : > { %v4097_v23 = vrot.slane %v7055_v52, 1  ;;  %v7359_v5 = vsel %vm2357_vm5, %v2383_v3, %v2387_v29  ;;  %v7372_v3 = vor.u32 %v4426_v63, %v4425_v16  ;;  %v4442_v29 = vrot.slane %v3819_v45, 2 }
 0x146   : > { %v2393_v16 = vor.u32 %v6920_v30, %v2392_v33 }
 0x148   : > { %v1588_v26 = vpop.permute.xlu1 %1587  ;;  %v1583_v20 = vpop.permute.xlu0 %1582  ;;  %5719 = vmatmul.mubr.msk.bf16.gmra.mrb[8].mxu1 %vm919_vm1, %v7320_v59 }
 0x149   : > { %5722 = vmatprep.mubr.msk.bf16.mxu1 %vm919_vm1, %v7323_v2  ;;  %v7356_v20 = vsel %vm2357_vm5, %v2380_v13, %v2384_v10 }
 0x14a   : > { %5871 = vmatmul.mubr.msk.bf16.gmra.mrb[24].mxu0 %vm919_vm1, %v7066_v61  ;;  %v2389_v61 = vrot.slane %v6938_v58, 7  ;;  %v4098_v58 = vsel %vm4095_vm6, %v4096_v7, %v4097_v23  ;;  %v4099_v7 = vrot.slane %v7071_v22, 1 }
 0x14b   : > { %5874 = vmatprep.mubr.msk.bf16.mxu0 %vm919_vm1, %v3822_v1  ;;  %v4429_v1 = vrot.slane %v7303_v25, 1 }
 0x14c   : > { %v1598_v9 = vpop.permute.xlu1 %1597  ;;  %v1593_v26 = vpop.permute.xlu0 %1592  ;;  %v2390_v42 = vor.u32 %v6913_v36, %v2389_v61  ;;  %v4503_v36 = vsel %vm1824_vm0, %v7127_v46, 0  ;;  %v2394_v30 = vsel %vm2357_vm5, %v2389_v61, %v2393_v16  ;;  %v7810_v16 = vld [vmem:[#allocation5_spill] sm:$0xff] }
 0x14d   : > { %v4430_v9 = vrot.slane %v7268_v48, 2  ;;  %v7386_v26 = vor.u32 %v4442_v29, %v4441_v32 }
 0x14f   : > { %v7374_v10 = vor.u32 %v4430_v9, %v4429_v1  ;;  %v2395_v1 = vrot.slane %v6968_v19, 7  ;;  %v2398_v9 = vrot.slane %v7007_v35, 7  ;;  %v2401_v35 = vrot.slane %v7018_v54, 7 }
 0x150   : > { %v1608_v49 = vpop.permute.xlu1 %1607  ;;  %v1603_v13 = vpop.permute.xlu0 %1602  ;;  %5723 = vmatmul.mubr.msk.bf16.gmra.mrb[12].mxu1 %vm919_vm1, %v7356_v20 }
 0x151   : > { %5726 = vmatprep.mubr.msk.bf16.mxu1 %vm919_vm1, %v7359_v5  ;;  %v7383_v24 = vsel %vm4376_vm7, %v7372_v3, %v7374_v10  ;;  %v4100_v13 = vsel %vm4095_vm6, %v4097_v23, %v4099_v7  ;;  %v2396_v19 = vor.u32 %v6949_v41, %v2395_v1  ;;  %v2399_v29 = vor.u32 %v6956_v40, %v2398_v9  ;;  %v7809_v40 = vld [vmem:[#allocation4_spill] sm:$0xff] }
 0x152   : > { %5875 = vmatmul.mubr.msk.bf16.gmra.mrb[28].mxu0 %vm919_vm1, %v3830_v11  ;;  %v2391_v11 = vsel %vm2357_vm5, %v7327_v47, %v2390_v42  ;;  %v7410_v42 = vld [vmem:[#allocation2 + $0xf0] sm:$0xff]  ;;  %v2402_v54 = vor.u32 %v7809_v40, %v2401_v35  ;;  %v6232_v40 = vld [vmem:[#allocation2 + $0xf8] sm:$0xff] }
 0x153   : > { %5880 = vmatprep.mubr.msk.bf16.mxu0 %vm919_vm1, %v4098_v58  ;;  %v4102_v58 = vsel %vm4095_vm6, %v4099_v7, %v4101_v17  ;;  %v2397_v61 = vsel %vm2357_vm5, %v2392_v33, %v2396_v19  ;;  %v2400_v23 = vsel %vm2357_vm5, %v2395_v1, %v2399_v29  ;;  %v2408_v33 = vshrl.u32 %v7410_v42, 16 }
 0x154   : > { %v1618_v48 = vpop.permute.xlu1 %1617  ;;  %v1613_v63 = vpop.permute.xlu0 %1612  ;;  %v7811_v1 = vrot.slane %v7138_v0, 1  ;;  %v4115_v29 = vrot.slane %v7202_v43, 1 }
 0x155   : > { %v2404_v48 = vrot.slane %v7043_v44, 7  ;;  %v7808_v63 = vrot.slane %v7102_v14, 1  ;;  %v4109_v44 = vrot.slane %v7142_v34, 1 }
 0x157   : > { %v4104_v41 = vsel %vm4095_vm6, %v4101_v17, %v7808_v63  ;;  %v2405_v7 = vor.u32 %v7810_v16, %v2404_v48  ;;  %v4110_v34 = vsel %vm4095_vm6, %v7811_v1, %v4109_v44  ;;  %v6231_v63 = vld [vmem:[#allocation2 + $0xf0] sm:$0xff]  ;;  %v4381_v16 = vshll.u32 %v7336_v55, 16 }
 0x158   : > { %v1628_v45 = vpop.permute.xlu1 %1627  ;;  %v1623_v49 = vpop.permute.xlu0 %1622  ;;  %5727 = vmatmul.mubr.msk.bf16.gmra.mrb[16].mxu1 %vm919_vm1, %v2391_v11  ;;  %v7424_v11 = vrot.slane %v2408_v33, 7  ;;  %v2749_v33 = vrot.slane %v7183_v12, 7 }
 0x159   : > { %5730 = vmatprep.mubr.msk.bf16.mxu1 %vm919_vm1, %v2394_v30  ;;  %v2403_v45 = vsel %vm2357_vm5, %v2398_v9, %v2402_v54  ;;  %v2406_v17 = vsel %vm2357_vm5, %v2401_v35, %v2405_v7  ;;  %v4111_v9 = vrot.slane %v7155_v6, 1  ;;  %v4123_v54 = vrot.slane %v6232_v40, 1 }
 0x15a   : > { %5881 = vmatmul.mubr.msk.bf16.vlgmr.msra.gmra.mrb[0].mxu0 %vm919_vm1, %v4100_v13  ;;  %v7813_v7 = vrot.slane %v7270_v27, 1  ;;  %v7824_v40 = vshll.u32 %v7102_v14, 16 }
 0x15b   : > { %5913 = vmatpush3.bf16.msra.mxu0 %v4503_v36  ;;  %5884 = vmatprep.mubr.msk.bf16.mxu0 %vm919_vm1, %v4102_v58  ;;  %v2659_v36 = vld [vmem:[#allocation2 + $0x78] sm:$0x80]  ;;  %v4113_v58 = vrot.slane %v7174_v38, 1  ;;  %v4112_v19 = vsel %vm4095_vm6, %v4109_v44, %v4111_v9 }
 0x15c   : > { %v1638_v46 = vpop.permute.xlu1 %1637  ;;  %v1633_v32 = vpop.permute.xlu0 %1632  ;;  %v2679_v49 = vshrl.u32 %v2659_v36, 16  ;;  %v4126_v44 = vsel %vm4095_vm6, %v4123_v54, %v7813_v7  ;;  %v7815_v36 = vshll.u32 %v7055_v52, 16 }
 0x15d   : > { %v4114_v32 = vsel %vm4095_vm6, %v4111_v9, %v4113_v58  ;;  %v4116_v35 = vsel %vm4095_vm6, %v4113_v58, %v4115_v29  ;;  %v2765_v9 = vrot.slane %v7237_v51, 7  ;;  %v7817_v58 = vshll.u32 %v7071_v22, 16 }
 0x15e   : > { %v2681_v13 = vrot.slane %v2679_v49, 7 }
 0x160   : > { %5731 = vmatmul.mubr.msk.bf16.gmra.mrb[20].mxu1 %vm919_vm1, %v2397_v61  ;;  %v4117_v61 = vrot.slane %v7208_v60, 1 }
 0x161   : > { %5734 = vmatprep.mubr.msk.bf16.mxu1 %vm919_vm1, %v2400_v23 }
 0x162   : > { %5885 = vmatmul.mubr.msk.bf16.gmra.mrb[4].mxu0 %vm919_vm1, %v4104_v41  ;;  %v4118_v23 = vsel %vm4095_vm6, %v4115_v29, %v4117_v61  ;;  %v4121_v41 = vrot.slane %v6231_v63, 1  ;;  %v7820_v29 = vld [vmem:[#allocation9_spill] sm:$0xff]  ;;  %v7822_v63 = vld [vmem:[#allocation12_spill] sm:$0xff] }
 0x163   : > { %5888 = vmatprep.mubr.msk.bf16.mxu0 %vm919_vm1, %v7224_v8  ;;  %v2411_v8 = vshll.u32 %v7410_v42, 16 }
 0x165   : > { %v7437_v30 = vor.u32 %v2411_v8, %v7424_v11 }
 0x167   : > { %v2414_v46 = vsel %vm2357_vm5, %v2404_v48, %v7437_v30  ;;  %v4119_v48 = vrot.slane %v7254_v39, 1 }
 0x168   : > { %5735 = vmatmul.mubr.msk.bf16.gmra.mrb[24].mxu1 %vm919_vm1, %v2403_v45  ;;  %v7814_v45 = vshrl.u32 %v7055_v52, 16  ;;  %v7816_v52 = vshrl.u32 %v7071_v22, 16 }
 0x169   : > { %5738 = vmatprep.mubr.msk.bf16.mxu1 %vm919_vm1, %v2406_v17  ;;  %v4386_v17 = vrot.slane %v7815_v36, 2  ;;  %v7829_v36 = vrot.slane %v7276_v4, 7  ;;  %v7831_v4 = vshll.u32 %v7138_v0, 16 }
 0x16a   : > { %5889 = vmatmul.mubr.msk.bf16.gmra.mrb[8].mxu0 %vm919_vm1, %v7233_v53  ;;  %v2689_v53 = vsel %vm2357_vm5, %v2681_v13, %v7214_v28  ;;  %v7812_v28 = vld [vmem:[#allocation3_spill] sm:$0xff]  ;;  %v4389_v13 = vrot.slane %v7816_v52, 1  ;;  %v4409_v52 = vrot.slane %v7183_v12, 1 }
 0x16b   : > { %5892 = vmatprep.mubr.msk.bf16.mxu0 %vm919_vm1, %v4110_v34  ;;  %v2757_v34 = vrot.slane %v7199_v18, 7 }
 0x170   : > { %5739 = vmatmul.mubr.msk.bf16.gmra.mrb[28].mxu1 %vm919_vm1, %v2414_v46  ;;  %v4390_v46 = vrot.slane %v7817_v58, 2 }
 0x171   : > { %5744 = vmatprep.mubr.msk.bf16.mxu1 %vm919_vm1, %v2689_v53 }
 0x172   : > { %5893 = vmatmul.mubr.msk.bf16.gmra.mrb[12].mxu0 %vm919_vm1, %v4112_v19 }
 0x173   : > { %5896 = vmatprep.mubr.msk.bf16.mxu0 %vm919_vm1, %v4114_v32 }
 0x178   : > { %5745 = vmatmul.mubr.msk.bf16.vlgmr.msra.gmra.mrb[0].mxu1 %vm919_vm1, %v7261_v57  ;;  %v4120_v57 = vsel %vm4095_vm6, %v4117_v61, %v4119_v48  ;;  %v2760_v61 = vor.u32 %v7820_v29, %v2757_v34 }
 0x179   : > { %5748 = vmatprep.mubr.msk.bf16.mxu1 %vm919_vm1, %v7289_v31  ;;  %5947 = vmatpush3.bf16.msra.mxu1 %v7812_v28  ;;  %v4122_v31 = vsel %vm4095_vm6, %v4119_v48, %v4121_v41  ;;  %v7821_v28 = vld [vmem:[#allocation10_spill] sm:$0xff] }
 0x17a   : > { %5897 = vmatmul.mubr.msk.bf16.gmra.mrb[16].mxu0 %vm919_vm1, %v4116_v35  ;;  %v2768_v35 = vor.u32 %v7821_v28, %v2765_v9  ;;  %v2761_v48 = vsel %vm2357_vm5, %v2749_v33, %v2760_v61 }
 0x17b   : > { %5900 = vmatprep.mubr.msk.bf16.mxu0 %vm919_vm1, %v4118_v23  ;;  %v4391_v23 = vor.u32 %v4390_v46, %v4389_v13  ;;  %v4410_v13 = vrot.slane %v7161_v21, 2 }
 0x180   : > { %5749 = vmatmul.mubr.msk.bf16.gmra.mrb[4].mxu1 %vm919_vm1, %v7300_v15  ;;  %v4378_v15 = vshrl.u32 %v7336_v55, 16  ;;  %v2752_v55 = vor.u32 %v7161_v21, %v2749_v33 }
 0x181   : > { %5752 = vmatprep.mubr.msk.bf16.mxu1 %vm919_vm1, %v7320_v59  ;;  %v4124_v59 = vsel %vm4095_vm6, %v4121_v41, %v4123_v54  ;;  %v2769_v41 = vsel %vm2357_vm5, %v2757_v34, %v2768_v35  ;;  %v4398_v54 = vrot.slane %v7824_v40, 2 }
 0x182   : > { %5901 = vmatmul.mubr.msk.bf16.gmra.mrb[20].mxu0 %vm919_vm1, %v4120_v57  ;;  %v4380_v8 = vrot.slane %v4378_v15, 1  ;;  %v2753_v27 = vsel %vm2357_vm5, %v7327_v47, %v2752_v55  ;;  %v7819_v47 = vshll.u32 %v7079_v50, 16  ;;  %v7823_v57 = vshrl.u32 %v7102_v14, 16  ;;  %v7825_v15 = vld [vmem:[#allocation8_spill] sm:$0xff] }
 0x183   : > { %5904 = vmatprep.mubr.msk.bf16.mxu0 %vm919_vm1, %v4122_v31  ;;  %v7827_v7 = vshll.u32 %v7825_v15, 16 }
 0x184   : > { %v4394_v32 = vrot.slane %v7819_v47, 2  ;;  %v4397_v31 = vrot.slane %v7823_v57, 1  ;;  %v4413_v47 = vrot.slane %v7199_v18, 1  ;;  %v6233_v18 = vld [vmem:[#allocation2 + $0xc0] sm:$0xff] }
 0x186   : > { %v4399_v14 = vor.u32 %v4398_v54, %v4397_v31 }
 0x188   : > { %5753 = vmatmul.mubr.msk.bf16.gmra.mrb[8].mxu1 %vm919_vm1, %v7323_v2  ;;  %v4385_v2 = vrot.slane %v7814_v45, 1  ;;  %v7828_v45 = vld [vmem:[#allocation11_spill] sm:$0xff] }
 0x189   : > { %5756 = vmatprep.mubr.msk.bf16.mxu1 %vm919_vm1, %v7356_v20  ;;  %v4383_v20 = vrot.slane %v4381_v16, 2  ;;  %v7826_v16 = vshrl.u32 %v7825_v15, 16 }
 0x18a   : > { %5905 = vmatmul.mubr.msk.bf16.gmra.mrb[24].mxu0 %vm919_vm1, %v4124_v59  ;;  %v4387_v1 = vor.u32 %v4386_v17, %v4385_v2  ;;  %v2784_v17 = vor.u32 %v7228_v56, %v7829_v36  ;;  %v4406_v56 = vrot.slane %v7831_v4, 2 }
 0x18b   : > { %5908 = vmatprep.mubr.msk.bf16.mxu0 %vm919_vm1, %v4126_v44  ;;  %v4384_v49 = vor.u32 %v4383_v20, %v4380_v8  ;;  %v4401_v59 = vrot.slane %v7826_v16, 1  ;;  %v4402_v44 = vrot.slane %v7827_v7, 2 }
 0x18d   : > { %v4388_v53 = vsel %vm4376_vm7, %v4384_v49, %v4387_v1  ;;  %v4403_v55 = vor.u32 %v4402_v44, %v4401_v59  ;;  %v4373_v59 = vld [vmem:[#allocation2 + $0x108] sm:$0x3] }
 0x18e   : > { %v4449_v44 = vshll.u32 %v4373_v59, 16 }
 0x190   : > { %5757 = vmatmul.mubr.msk.bf16.gmra.mrb[12].mxu1 %vm919_vm1, %v7359_v5  ;;  %v7818_v5 = vshrl.u32 %v7079_v50, 16  ;;  %v4392_v50 = vsel %vm4376_vm7, %v4387_v1, %v4391_v23  ;;  %v7534_v1 = vld [vmem:[#allocation2 + $0xf8] sm:$0xff] }
 0x191   : > { %5760 = vmatprep.mubr.msk.bf16.mxu1 %vm919_vm1, %v2753_v27  ;;  %v7830_v27 = vshrl.u32 %v7138_v0, 16  ;;  %v2803_v58 = vshrl.u32 %v7534_v1, 16  ;;  %v7832_v0 = vrot.slane %v7303_v25, 7  ;;  %v2806_v21 = vshll.u32 %v7534_v1, 16 }
 0x192   : > { %5909 = vmatmul.mubr.msk.bf16.gmra.mrb[28].mxu0 %vm919_vm1, %v7295_v37  ;;  %v4393_v19 = vrot.slane %v7818_v5, 1  ;;  %v2773_v37 = vrot.slane %v7822_v63, 7  ;;  %v4418_v25 = vrot.slane %v7821_v28, 2 }
 0x193   : > { %5914 = vmatprep.mubr.msk.bf16.mxu0 %vm919_vm1, %v4388_v53  ;;  %v4405_v49 = vrot.slane %v7830_v27, 1  ;;  %v4411_v53 = vor.u32 %v4410_v13, %v4409_v52  ;;  %v2805_v5 = vrot.slane %v2803_v58, 7 }
 0x194   : > { %v4395_v22 = vor.u32 %v4394_v32, %v4393_v19  ;;  %v2776_v2 = vor.u32 %v7828_v45, %v2773_v37  ;;  %v2785_v20 = vsel %vm2357_vm5, %v2773_v37, %v2784_v17  ;;  %v2801_v19 = vsel %vm2357_vm5, %v7832_v0, %v7437_v30 }
 0x195   : > { %v4407_v46 = vor.u32 %v4406_v56, %v4405_v49  ;;  %v4414_v32 = vrot.slane %v7820_v29, 2  ;;  %v2808_v30 = vor.u32 %v2806_v21, %v2805_v5 }
 0x196   : > { %v4396_v33 = vsel %vm4376_vm7, %v4391_v23, %v4395_v22  ;;  %v2777_v8 = vsel %vm2357_vm5, %v2765_v9, %v2776_v2  ;;  %v4400_v34 = vsel %vm4376_vm7, %v4395_v22, %v4399_v14  ;;  %v4404_v9 = vsel %vm4376_vm7, %v4399_v14, %v4403_v55 }
 0x197   : > { %v4408_v12 = vsel %vm4376_vm7, %v4403_v55, %v4407_v46  ;;  %v4412_v61 = vsel %vm4376_vm7, %v4407_v46, %v4411_v53  ;;  %v4415_v35 = vor.u32 %v4414_v32, %v4413_v47  ;;  %v2809_v22 = vsel %vm2357_vm5, %v7424_v11, %v2808_v30 }
 0x198   : > { %5761 = vmatmul.mubr.msk.bf16.gmra.mrb[16].mxu1 %vm919_vm1, %v2761_v48  ;;  %v4421_v48 = vrot.slane %v7822_v63, 1  ;;  %v4451_v2 = vrot.slane %v4449_v44, 2 }
 0x199   : > { %5764 = vmatprep.mubr.msk.bf16.mxu1 %vm919_vm1, %v2769_v41  ;;  %v4416_v29 = vsel %vm4376_vm7, %v4411_v53, %v4415_v35  ;;  %v7833_v41 = vld [vmem:[#allocation6_spill] sm:$0xff] }
 0x19a   : > { %5915 = vmatmul.mubr.msk.bf16.vlgmr.msra.gmra.mrb[0].mxu0 %vm919_vm1, %v4392_v50  ;;  %v7834_v50 = vshrl.u32 %v7833_v41, 16  ;;  %v7835_v31 = vshll.u32 %v7833_v41, 16 }
 0x19b   : > { %5918 = vmatprep.mubr.msk.bf16.mxu0 %vm919_vm1, %v4396_v33 }
 0x19c   : > { %v4433_v57 = vrot.slane %v7834_v50, 1  ;;  %v4434_v40 = vrot.slane %v7835_v31, 2 }
 0x19e   : > { %v4435_v54 = vor.u32 %v4434_v40, %v4433_v57 }
 0x1a0   : > { %5765 = vmatmul.mubr.msk.bf16.gmra.mrb[20].mxu1 %vm919_vm1, %v2777_v8  ;;  %v4436_v16 = vsel %vm4376_vm7, %v7374_v10, %v4435_v54 }
 0x1a1   : > { %5768 = vmatprep.mubr.msk.bf16.mxu1 %vm919_vm1, %v2785_v20 }
 0x1a2   : > { %5919 = vmatmul.mubr.msk.bf16.gmra.mrb[4].mxu0 %vm919_vm1, %v4400_v34 }
 0x1a3   : > { %5922 = vmatprep.mubr.msk.bf16.mxu0 %vm919_vm1, %v4404_v9 }
 0x1a8   : > { %5769 = vmatmul.mubr.msk.bf16.gmra.mrb[24].mxu1 %vm919_vm1, %v7343_v62  ;;  %v4417_v62 = vrot.slane %v7237_v51, 1  ;;  %v4422_v51 = vrot.slane %v7828_v45, 2 }
 0x1a9   : > { %5772 = vmatprep.mubr.msk.bf16.mxu1 %vm919_vm1, %v2801_v19 }
 0x1aa   : > { %5923 = vmatmul.mubr.msk.bf16.gmra.mrb[8].mxu0 %vm919_vm1, %v4408_v12  ;;  %v4419_v23 = vor.u32 %v4418_v25, %v4417_v62  ;;  %v4423_v37 = vor.u32 %v4422_v51, %v4421_v48 }
 0x1ab   : > { %5926 = vmatprep.mubr.msk.bf16.mxu0 %vm919_vm1, %v4412_v61 }
 0x1ac   : > { %v4420_v28 = vsel %vm4376_vm7, %v4415_v35, %v4419_v23  ;;  %v4424_v11 = vsel %vm4376_vm7, %v4419_v23, %v4423_v37  ;;  %v4428_v63 = vsel %vm4376_vm7, %v4423_v37, %v7372_v3 }
 0x1b0   : > { %5773 = vmatmul.mubr.msk.bf16.gmra.mrb[28].mxu1 %vm919_vm1, %v2809_v22 }
 0x1b1   : > { %5794 = vmatprep.mubr.msk.bf16.mxu1 %vm919_vm1, %v6233_v18 }
 0x1b2   : > { %5927 = vmatmul.mubr.msk.bf16.gmra.mrb[12].mxu0 %vm919_vm1, %v4416_v29 }
 0x1b3   : > { %5930 = vmatprep.mubr.msk.bf16.mxu0 %vm919_vm1, %v4420_v28 }
 0x1b8   : > { %5795 = vmatmul.mubr.msk.bf16.vlgmr.msra.gmra.mrb[16].mxu1 %vm919_vm1, %v7155_v6  ;;  %v7836_v6 = vld [vmem:[#allocation7_spill] sm:$0xff] }
 0x1b9   : > { %5798 = vmatprep.mubr.msk.bf16.mxu1 %vm919_vm1, %v7174_v38  ;;  %v7837_v38 = vshrl.u32 %v7836_v6, 16  ;;  %v7838_v3 = vshll.u32 %v7836_v6, 16 }
 0x1ba   : > { %5931 = vmatmul.mubr.msk.bf16.gmra.mrb[16].mxu0 %vm919_vm1, %v4424_v11 }
 0x1bb   : > { %5934 = vmatprep.mubr.msk.bf16.mxu0 %vm919_vm1, %v4428_v63  ;;  %v4437_v33 = vrot.slane %v7837_v38, 1  ;;  %v4438_v15 = vrot.slane %v7838_v3, 2 }
 0x1bd   : > { %v4439_v7 = vor.u32 %v4438_v15, %v4437_v33 }
 0x1bf   : > { %v4444_v10 = vsel %vm4376_vm7, %v4439_v7, %v7386_v26 }
 0x1c0   : > { %5799 = vmatmul.mubr.msk.bf16.gmra.mrb[20].mxu1 %vm919_vm1, %v7202_v43  ;;  %v4446_v43 = vshrl.u32 %v4373_v59, 16 }
 0x1c1   : > { %5802 = vmatprep.mubr.msk.bf16.mxu1 %vm919_vm1, %v7208_v60  ;;  %v4440_v60 = vsel %vm4376_vm7, %v4435_v54, %v4439_v7 }
 0x1c2   : > { %5935 = vmatmul.mubr.msk.bf16.gmra.mrb[20].mxu0 %vm919_vm1, %v7383_v24  ;;  %v4448_v45 = vrot.slane %v4446_v43, 1 }
 0x1c3   : > { %5938 = vmatprep.mubr.msk.bf16.mxu0 %vm919_vm1, %v4436_v16 }
 0x1c4   : > { %v4452_v24 = vor.u32 %v4451_v2, %v4448_v45 }
 0x1c8   : > { %5803 = vmatmul.mubr.msk.bf16.gmra.mrb[24].mxu1 %vm919_vm1, %v7254_v39  ;;  %v4453_v39 = vsel %vm4376_vm7, %v7386_v26, %v4452_v24 }
 0x1c9   : > { %5806 = vmatprep.mubr.msk.bf16.mxu1 %vm919_vm1, %v7410_v42 }
 0x1ca   : > { %5939 = vmatmul.mubr.msk.bf16.gmra.mrb[24].mxu0 %vm919_vm1, %v4440_v60 }
 0x1cb   : > { %5942 = vmatprep.mubr.msk.bf16.mxu0 %vm919_vm1, %v4444_v10 }
 0x1d0   : > { %5807 = vmatmul.mubr.msk.bf16.gmra.mrb[28].mxu1 %vm919_vm1, %v7534_v1 }
 0x1d2   : > { %5943 = vmatmul.mubr.msk.bf16.gmra.mrb[28].mxu0 %vm919_vm1, %v4453_v39 }
 0x24b   : > { %v5746_v42 = vpop.f32.mrb[0].mxu1 }
 0x24c   : > { %v2895_v36 = vpop.f32.mrb[1].mxu1 }
 0x24d   : > { %v5747_v17 = vpop.f32.mrb[2].mxu1 }
 0x24e   : > { %v2898_v14 = vpop.f32.mrb[3].mxu1 }
 0x253   : > { %v5750_v55 = vpop.f32.mrb[4].mxu1 }
 0x254   : > { %v2911_v8 = vpop.f32.mrb[5].mxu1 }
 0x255   : > { %v5751_v20 = vpop.f32.mrb[6].mxu1 }
 0x256   : > { %v2914_v34 = vpop.f32.mrb[7].mxu1 }
 0x25b   : > { %v5754_v27 = vpop.f32.mrb[8].mxu1 }
 0x25c   : > { %v2927_v49 = vpop.f32.mrb[9].mxu1 }
 0x25d   : > { %v5755_v4 = vpop.f32.mrb[10].mxu1 }
 0x25e   : > { %v2930_v56 = vpop.f32.mrb[11].mxu1 }
 0x263   : > { %v5758_v9 = vpop.f32.mrb[12].mxu1 }
 0x264   : > { %v2943_v1 = vpop.f32.mrb[13].mxu1 }
 0x265   : > { %v5759_v52 = vpop.f32.mrb[14].mxu1 }
 0x266   : > { %v2946_v26 = vpop.f32.mrb[15].mxu1 }
 0x26d   : > { %v5916_v13 = vpop.f32.mrb[0].mxu0 }
 0x26e   : > { %v5948_v58 = vadd.f32 %v5916_v13, %v5746_v42  ;;  %v4539_v46 = vpop.f32.mrb[1].mxu0 }
 0x26f   : > { %v5949_v53 = vadd.f32 %v4539_v46, %v2895_v36  ;;  %v5917_v5 = vpop.f32.mrb[2].mxu0 }
 0x270   : > { %v5220_v0 = vpack.c.bf16 %v5948_v58, %v5948_v58  ;;  %v5950_v19 = vadd.f32 %v5917_v5, %v5747_v17  ;;  %v4542_v12 = vpop.f32.mrb[3].mxu0 }
 0x271   : > { %v5218_v21 = vpack.c.bf16 %v5949_v53, %v5949_v53  ;;  %v5951_v47 = vadd.f32 %v4542_v12, %v2898_v14 }
 0x272   : > { %4829 = vst.msk [vmem:[%s6331_s14 + $0x8] sm:$0xf] %vm4826_vm8, %v5220_v0  ;;  %v5221_v32 = vpack.c.bf16 %v5950_v19, %v5950_v19 }
 0x273   : > { %4827 = vst.msk [vmem:[%s6331_s14] sm:$0xf] %vm4826_vm8, %v5218_v21  ;;  %v5219_v61 = vpack.c.bf16 %v5951_v47, %v5951_v47 }
 0x274   : > { %4830 = vst.msk [vmem:[%s6331_s14 + $0xc] sm:$0xf] %vm4826_vm8, %v5221_v32 }
 0x275   : > { %4828 = vst.msk [vmem:[%s6331_s14 + $0x4] sm:$0xf] %vm4826_vm8, %v5219_v61  ;;  %v5920_v62 = vpop.f32.mrb[4].mxu0 }
 0x276   : > { %v5952_v25 = vadd.f32 %v5920_v62, %v5750_v55  ;;  %v4555_v30 = vpop.f32.mrb[5].mxu0 }
 0x277   : > { %v5953_v35 = vadd.f32 %v4555_v30, %v2911_v8  ;;  %v5921_v23 = vpop.f32.mrb[6].mxu0 }
 0x278   : > { %v5224_v22 = vpack.c.bf16 %v5952_v25, %v5952_v25  ;;  %v5954_v18 = vadd.f32 %v5921_v23, %v5751_v20  ;;  %v4558_v29 = vpop.f32.mrb[7].mxu0 }
 0x279   : > { %v5222_v48 = vpack.c.bf16 %v5953_v35, %v5953_v35  ;;  %v5955_v51 = vadd.f32 %v4558_v29, %v2914_v34 }
 0x27a   : > { %4833 = vst.msk [vmem:[%s6331_s14 + $0x18] sm:$0xf] %vm4826_vm8, %v5224_v22  ;;  %v5225_v28 = vpack.c.bf16 %v5954_v18, %v5954_v18 }
 0x27b   : > { %4831 = vst.msk [vmem:[%s6331_s14 + $0x10] sm:$0xf] %vm4826_vm8, %v5222_v48  ;;  %v5223_v37 = vpack.c.bf16 %v5955_v51, %v5955_v51 }
 0x27c   : > { %4834 = vst.msk [vmem:[%s6331_s14 + $0x1c] sm:$0xf] %vm4826_vm8, %v5225_v28 }
 0x27d   : > { %4832 = vst.msk [vmem:[%s6331_s14 + $0x14] sm:$0xf] %vm4826_vm8, %v5223_v37  ;;  %v5924_v11 = vpop.f32.mrb[8].mxu0 }
 0x27e   : > { %v5956_v63 = vadd.f32 %v5924_v11, %v5754_v27  ;;  %v4571_v41 = vpop.f32.mrb[9].mxu0 }
 0x27f   : > { %v5957_v50 = vadd.f32 %v4571_v41, %v2927_v49  ;;  %v5925_v57 = vpop.f32.mrb[10].mxu0 }
 0x280   : > { %v5228_v31 = vpack.c.bf16 %v5956_v63, %v5956_v63  ;;  %v5958_v40 = vadd.f32 %v5925_v57, %v5755_v4  ;;  %v4574_v54 = vpop.f32.mrb[11].mxu0 }
 0x281   : > { %v5226_v6 = vpack.c.bf16 %v5957_v50, %v5957_v50  ;;  %v5959_v38 = vadd.f32 %v4574_v54, %v2930_v56 }
 0x282   : > { %4837 = vst.msk [vmem:[%s6331_s14 + $0x28] sm:$0xf] %vm4826_vm8, %v5228_v31  ;;  %v5229_v33 = vpack.c.bf16 %v5958_v40, %v5958_v40 }
 0x283   : > { %4835 = vst.msk [vmem:[%s6331_s14 + $0x20] sm:$0xf] %vm4826_vm8, %v5226_v6  ;;  %v5227_v3 = vpack.c.bf16 %v5959_v38, %v5959_v38 }
 0x284   : > { %4838 = vst.msk [vmem:[%s6331_s14 + $0x2c] sm:$0xf] %vm4826_vm8, %v5229_v33 }
 0x285   : > { %4836 = vst.msk [vmem:[%s6331_s14 + $0x24] sm:$0xf] %vm4826_vm8, %v5227_v3  ;;  %v5928_v15 = vpop.f32.mrb[12].mxu0 }
 0x286   : > { %v5960_v16 = vadd.f32 %v5928_v15, %v5758_v9  ;;  %v4587_v59 = vpop.f32.mrb[13].mxu0 }
 0x287   : > { %v5961_v7 = vadd.f32 %v4587_v59, %v2943_v1  ;;  %v5929_v43 = vpop.f32.mrb[14].mxu0 }
 0x288   : > { %v5232_v44 = vpack.c.bf16 %v5960_v16, %v5960_v16  ;;  %v5962_v60 = vadd.f32 %v5929_v43, %v5759_v52  ;;  %v4590_v45 = vpop.f32.mrb[15].mxu0 }
 0x289   : > { %v5230_v2 = vpack.c.bf16 %v5961_v7, %v5961_v7  ;;  %v5963_v10 = vadd.f32 %v4590_v45, %v2946_v26 }
 0x28a   : > { %4841 = vst.msk [vmem:[%s6331_s14 + $0x38] sm:$0xf] %vm4826_vm8, %v5232_v44  ;;  %v5233_v24 = vpack.c.bf16 %v5962_v60, %v5962_v60 }
 0x28b   : > { %4839 = vst.msk [vmem:[%s6331_s14 + $0x30] sm:$0xf] %vm4826_vm8, %v5230_v2  ;;  %v5231_v39 = vpack.c.bf16 %v5963_v10, %v5963_v10  ;;  %v5796_v42 = vpop.f32.mrb[16].mxu1 }
 0x28c   : > { %4842 = vst.msk [vmem:[%s6331_s14 + $0x3c] sm:$0xf] %vm4826_vm8, %v5233_v24  ;;  %v3189_v36 = vpop.f32.mrb[17].mxu1 }
 0x28d   : > { %4840 = vst.msk [vmem:[%s6331_s14 + $0x34] sm:$0xf] %vm4826_vm8, %v5231_v39  ;;  %v5932_v17 = vpop.f32.mrb[16].mxu0  ;;  %v5797_v14 = vpop.f32.mrb[18].mxu1 }
 0x28e   : > { %v5964_v55 = vadd.f32 %v5932_v17, %v5796_v42  ;;  %v4603_v8 = vpop.f32.mrb[17].mxu0  ;;  %v3192_v20 = vpop.f32.mrb[19].mxu1 }
 0x28f   : > { %v5965_v34 = vadd.f32 %v4603_v8, %v3189_v36  ;;  %v5933_v27 = vpop.f32.mrb[18].mxu0 }
 0x290   : > { %v5236_v49 = vpack.c.bf16 %v5964_v55, %v5964_v55  ;;  %v5966_v4 = vadd.f32 %v5933_v27, %v5797_v14  ;;  %v4606_v56 = vpop.f32.mrb[19].mxu0 }
 0x291   : > { %v5234_v9 = vpack.c.bf16 %v5965_v34, %v5965_v34  ;;  %v5967_v1 = vadd.f32 %v4606_v56, %v3192_v20 }
 0x292   : > { %4845 = vst.msk [vmem:[%s6331_s14 + $0x48] sm:$0xf] %vm4826_vm8, %v5236_v49  ;;  %v5237_v52 = vpack.c.bf16 %v5966_v4, %v5966_v4 }
 0x293   : > { %4843 = vst.msk [vmem:[%s6331_s14 + $0x40] sm:$0xf] %vm4826_vm8, %v5234_v9  ;;  %v5235_v26 = vpack.c.bf16 %v5967_v1, %v5967_v1  ;;  %v5800_v13 = vpop.f32.mrb[20].mxu1 }
 0x294   : > { %4846 = vst.msk [vmem:[%s6331_s14 + $0x4c] sm:$0xf] %vm4826_vm8, %v5237_v52  ;;  %v3205_v58 = vpop.f32.mrb[21].mxu1 }
 0x295   : > { %4844 = vst.msk [vmem:[%s6331_s14 + $0x44] sm:$0xf] %vm4826_vm8, %v5235_v26  ;;  %v5936_v46 = vpop.f32.mrb[20].mxu0  ;;  %v5801_v53 = vpop.f32.mrb[22].mxu1 }
 0x296   : > { %v5968_v5 = vadd.f32 %v5936_v46, %v5800_v13  ;;  %v4619_v0 = vpop.f32.mrb[21].mxu0  ;;  %v3208_v19 = vpop.f32.mrb[23].mxu1 }
 0x297   : > { %v5969_v12 = vadd.f32 %v4619_v0, %v3205_v58  ;;  %v5937_v21 = vpop.f32.mrb[22].mxu0 }
 0x298   : > { %v5240_v47 = vpack.c.bf16 %v5968_v5, %v5968_v5  ;;  %v5970_v32 = vadd.f32 %v5937_v21, %v5801_v53  ;;  %v4622_v61 = vpop.f32.mrb[23].mxu0 }
 0x299   : > { %v5238_v62 = vpack.c.bf16 %v5969_v12, %v5969_v12  ;;  %v5971_v25 = vadd.f32 %v4622_v61, %v3208_v19 }
 0x29a   : > { %4849 = vst.msk [vmem:[%s6331_s14 + $0x58] sm:$0xf] %vm4826_vm8, %v5240_v47  ;;  %v5241_v30 = vpack.c.bf16 %v5970_v32, %v5970_v32 }
 0x29b   : > { %4847 = vst.msk [vmem:[%s6331_s14 + $0x50] sm:$0xf] %vm4826_vm8, %v5238_v62  ;;  %v5239_v35 = vpack.c.bf16 %v5971_v25, %v5971_v25  ;;  %v5804_v23 = vpop.f32.mrb[24].mxu1 }
 0x29c   : > { %4850 = vst.msk [vmem:[%s6331_s14 + $0x5c] sm:$0xf] %vm4826_vm8, %v5241_v30  ;;  %v3221_v22 = vpop.f32.mrb[25].mxu1 }
 0x29d   : > { %4848 = vst.msk [vmem:[%s6331_s14 + $0x54] sm:$0xf] %vm4826_vm8, %v5239_v35  ;;  %v5940_v18 = vpop.f32.mrb[24].mxu0  ;;  %v5805_v29 = vpop.f32.mrb[26].mxu1 }
 0x29e   : > { %v5972_v48 = vadd.f32 %v5940_v18, %v5804_v23  ;;  %v4635_v51 = vpop.f32.mrb[25].mxu0  ;;  %v3224_v28 = vpop.f32.mrb[27].mxu1 }
 0x29f   : > { %v5973_v37 = vadd.f32 %v4635_v51, %v3221_v22  ;;  %v5941_v11 = vpop.f32.mrb[26].mxu0 }
 0x2a0   : > { %v5244_v63 = vpack.c.bf16 %v5972_v48, %v5972_v48  ;;  %v5974_v41 = vadd.f32 %v5941_v11, %v5805_v29  ;;  %v4638_v50 = vpop.f32.mrb[27].mxu0 }
 0x2a1   : > { %v5242_v57 = vpack.c.bf16 %v5973_v37, %v5973_v37  ;;  %v5975_v31 = vadd.f32 %v4638_v50, %v3224_v28 }
 0x2a2   : > { %4853 = vst.msk [vmem:[%s6331_s14 + $0x68] sm:$0xf] %vm4826_vm8, %v5244_v63  ;;  %v5245_v40 = vpack.c.bf16 %v5974_v41, %v5974_v41 }
 0x2a3   : > { %4851 = vst.msk [vmem:[%s6331_s14 + $0x60] sm:$0xf] %vm4826_vm8, %v5242_v57  ;;  %v5243_v54 = vpack.c.bf16 %v5975_v31, %v5975_v31  ;;  %v5808_v6 = vpop.f32.mrb[28].mxu1 }
 0x2a4   : > { %4854 = vst.msk [vmem:[%s6331_s14 + $0x6c] sm:$0xf] %vm4826_vm8, %v5245_v40  ;;  %v3237_v38 = vpop.f32.mrb[29].mxu1 }
 0x2a5   : > { %4852 = vst.msk [vmem:[%s6331_s14 + $0x64] sm:$0xf] %vm4826_vm8, %v5243_v54  ;;  %v5944_v33 = vpop.f32.mrb[28].mxu0  ;;  %v5809_v3 = vpop.f32.mrb[30].mxu1 }
 0x2a6   : > { %v5976_v15 = vadd.f32 %v5944_v33, %v5808_v6  ;;  %v4651_v16 = vpop.f32.mrb[29].mxu0  ;;  %v3240_v59 = vpop.f32.mrb[31].mxu1 }
 0x2a7   : > { %v5977_v7 = vadd.f32 %v4651_v16, %v3237_v38  ;;  %v5945_v43 = vpop.f32.mrb[30].mxu0 }
 0x2a8   : > { %v5248_v44 = vpack.c.bf16 %v5976_v15, %v5976_v15  ;;  %v5978_v60 = vadd.f32 %v5945_v43, %v5809_v3  ;;  %v4654_v45 = vpop.f32.mrb[31].mxu0 }
 0x2a9   : > { %v5246_v2 = vpack.c.bf16 %v5977_v7, %v5977_v7  ;;  %v5979_v10 = vadd.f32 %v4654_v45, %v3240_v59 }
 0x2aa   : > { %4857 = vst.msk [vmem:[%s6331_s14 + $0x78] sm:$0xf] %vm4826_vm8, %v5248_v44  ;;  %v5249_v24 = vpack.c.bf16 %v5978_v60, %v5978_v60 }
 0x2ab   : > { %4855 = vst.msk [vmem:[%s6331_s14 + $0x70] sm:$0xf] %vm4826_vm8, %v5246_v2  ;;  %v5247_v39 = vpack.c.bf16 %v5979_v10, %v5979_v10 }
 0x2ac   : > { %4858 = vst.msk [vmem:[%s6331_s14 + $0x7c] sm:$0xf] %vm4826_vm8, %v5249_v24 }
 0x2ad   : > { %4856 = vst.msk [vmem:[%s6331_s14 + $0x74] sm:$0xf] %vm4826_vm8, %v5247_v39 }
 0x2ae PF: > { %4861 = sbr.rel (!%p6346_p10) target bundleno = 703 (0x2bf), region = 64  ;;  %vm4862_vm9 = vcmask (%p6346_p10), 125952   ;;  %v6243_v42 = vmov (%p6346_p10), 0  }
 0x2af   : > { %4863 = vst.msk [vmem:[%s6331_s14] sm:$0xf] (%p6346_p10), %vm4862_vm9, %v6243_v42  ;;  %4864 = vst.msk [vmem:[%s6331_s14 + $0x4] sm:$0xf] (%p6346_p10), %vm4862_vm9, %v6243_v42 }
 0x2b0   : > { %4865 = vst.msk [vmem:[%s6331_s14 + $0x8] sm:$0xf] (%p6346_p10), %vm4862_vm9, %v6243_v42  ;;  %4866 = vst.msk [vmem:[%s6331_s14 + $0xc] sm:$0xf] (%p6346_p10), %vm4862_vm9, %v6243_v42 }
 0x2b1   : > { %4867 = vst.msk [vmem:[%s6331_s14 + $0x10] sm:$0xf] (%p6346_p10), %vm4862_vm9, %v6243_v42  ;;  %4868 = vst.msk [vmem:[%s6331_s14 + $0x14] sm:$0xf] (%p6346_p10), %vm4862_vm9, %v6243_v42 }
 0x2b2   : > { %4869 = vst.msk [vmem:[%s6331_s14 + $0x18] sm:$0xf] (%p6346_p10), %vm4862_vm9, %v6243_v42  ;;  %4870 = vst.msk [vmem:[%s6331_s14 + $0x1c] sm:$0xf] (%p6346_p10), %vm4862_vm9, %v6243_v42 }
 0x2b3   : > { %4871 = vst.msk [vmem:[%s6331_s14 + $0x20] sm:$0xf] (%p6346_p10), %vm4862_vm9, %v6243_v42  ;;  %4872 = vst.msk [vmem:[%s6331_s14 + $0x24] sm:$0xf] (%p6346_p10), %vm4862_vm9, %v6243_v42 }
 0x2b4   : > { %4873 = vst.msk [vmem:[%s6331_s14 + $0x28] sm:$0xf] (%p6346_p10), %vm4862_vm9, %v6243_v42  ;;  %4874 = vst.msk [vmem:[%s6331_s14 + $0x2c] sm:$0xf] (%p6346_p10), %vm4862_vm9, %v6243_v42 }
 0x2b5   : > { %4875 = vst.msk [vmem:[%s6331_s14 + $0x30] sm:$0xf] %vm4862_vm9, %v6243_v42  ;;  %4876 = vst.msk [vmem:[%s6331_s14 + $0x34] sm:$0xf] %vm4862_vm9, %v6243_v42 }
 0x2b6   : > { %4877 = vst.msk [vmem:[%s6331_s14 + $0x38] sm:$0xf] %vm4862_vm9, %v6243_v42  ;;  %4878 = vst.msk [vmem:[%s6331_s14 + $0x3c] sm:$0xf] %vm4862_vm9, %v6243_v42 }
 0x2b7   : > { %4879 = vst.msk [vmem:[%s6331_s14 + $0x40] sm:$0xf] %vm4862_vm9, %v6243_v42  ;;  %4880 = vst.msk [vmem:[%s6331_s14 + $0x44] sm:$0xf] %vm4862_vm9, %v6243_v42 }
 0x2b8   : > { %4881 = vst.msk [vmem:[%s6331_s14 + $0x48] sm:$0xf] %vm4862_vm9, %v6243_v42  ;;  %4882 = vst.msk [vmem:[%s6331_s14 + $0x4c] sm:$0xf] %vm4862_vm9, %v6243_v42 }
 0x2b9   : > { %4883 = vst.msk [vmem:[%s6331_s14 + $0x50] sm:$0xf] %vm4862_vm9, %v6243_v42  ;;  %4884 = vst.msk [vmem:[%s6331_s14 + $0x54] sm:$0xf] %vm4862_vm9, %v6243_v42 }
 0x2ba   : > { %4885 = vst.msk [vmem:[%s6331_s14 + $0x58] sm:$0xf] %vm4862_vm9, %v6243_v42  ;;  %4886 = vst.msk [vmem:[%s6331_s14 + $0x5c] sm:$0xf] %vm4862_vm9, %v6243_v42 }
 0x2bb   : > { %4887 = vst.msk [vmem:[%s6331_s14 + $0x60] sm:$0xf] %vm4862_vm9, %v6243_v42  ;;  %4888 = vst.msk [vmem:[%s6331_s14 + $0x64] sm:$0xf] %vm4862_vm9, %v6243_v42 }
 0x2bc   : > { %4889 = vst.msk [vmem:[%s6331_s14 + $0x68] sm:$0xf] %vm4862_vm9, %v6243_v42  ;;  %4890 = vst.msk [vmem:[%s6331_s14 + $0x6c] sm:$0xf] %vm4862_vm9, %v6243_v42 }
 0x2bd   : > { %4891 = vst.msk [vmem:[%s6331_s14 + $0x70] sm:$0xf] %vm4862_vm9, %v6243_v42  ;;  %4892 = vst.msk [vmem:[%s6331_s14 + $0x74] sm:$0xf] %vm4862_vm9, %v6243_v42 }
 0x2be   : > { %4893 = vst.msk [vmem:[%s6331_s14 + $0x78] sm:$0xf] %vm4862_vm9, %v6243_v42  ;;  %4894 = vst.msk [vmem:[%s6331_s14 + $0x7c] sm:$0xf] %vm4862_vm9, %v6243_v42 }
 0x2bf PF: > { %s19_s30 = sadd.s32 1, %s6240_s30  }
 0x2c0   : > { %p16_p11 = scmp.ge.s32.totalorder %s19_s30, 7  }
 0x2c2   :  { %18 = sbr.rel (!%p16_p11) target bundleno = 1 (0x1), region = 117 }

</bundles_post_ra>
